<compile_context>
chip_gen: v7x
topology: tpu7x:2x2x1
jax: 0.10.0
libtpu: 0.0.40
codegen_flags: <defaults>
</compile_context>

<pallas_src>
import functools

import jax
import jax.numpy as jnp
from jax.experimental import pallas as pl
from jax.experimental.pallas import tpu as pltpu

BN_EPS = 1e-5
_LANE = 128
_SUB = 8
_TK_CAP = 1024
_TN_CAP = 512


def _round_up(x, m):
    return (x + m - 1) // m * m


def _pad2(x, rows, cols):
    r, c = x.shape
    if r == rows and c == cols:
        return x                                  # no copy when nothing to pad
    return jnp.pad(x, ((0, rows - r), (0, cols - c)))


@functools.lru_cache(maxsize=1)
def _vmem_caps():
    """Returns (block budget bytes, vmem_limit_bytes) for the running chip.
    v5e/v6e report 128 MiB VMEM, v7x 64 MiB; fall back to the smallest."""
    try:
        cap = int(pltpu.get_tpu_info().vmem_capacity_bytes)
    except Exception:
        cap = 64 * 1024 * 1024
    budget = cap // 2                             # what our block math may use
    limit = min(int(cap * 0.8), 120 * 1024 * 1024)
    return budget, limit


def _pick_tn(Np, cap):
    tn = max(_LANE, (min(Np, cap) // _LANE) * _LANE)
    while Np % tn:
        tn -= _LANE
    return tn


def _pick_tk(K, cap):
    if K <= cap:                                  # full-K block, no K padding
        return K, K
    Kp = _round_up(K, _LANE)
    d = Kp // _LANE
    best = 1
    for m in range(1, cap // _LANE + 1):
        if d % m == 0:
            best = m
    return _LANE * best, Kp


# --------------------------------------------------------------------------
# Pallas kernels
# --------------------------------------------------------------------------

def _make_fused_kernel(*, n_seg, act, use_bn, has_skip, m_true, multi_k):
    """Whole-M fused kernel: matmul + train-mode BN (or bias) + act + skip.
    Grid = (Cout tiles, K tiles).  When multi_k, an f32 VMEM accumulator is
    carried across K; otherwise no scratch at all."""

    def kernel(*refs):
        a_refs = refs[0:2 * n_seg:2]
        w_refs = refs[1:2 * n_seg:2]
        idx = 2 * n_seg
        g_ref = b_ref = bias_ref = skip_ref = None
        if use_bn:
            g_ref, b_ref = refs[idx], refs[idx + 1]
            idx += 2
        else:
            bias_ref = refs[idx]
            idx += 1
        if has_skip:
            skip_ref = refs[idx]
            idx += 1
        o_ref = refs[idx]
        idx += 1

        def finish(acc):
            if use_bn:
                # single-pass, folded BN (exact: padded rows are all-zero and
                # we divide by the true M)
                s = jnp.sum(acc, axis=0, keepdims=True)
                ss = jnp.sum(acc * acc, axis=0, keepdims=True)
                mean = s * (1.0 / m_true)
                var = jnp.maximum(ss * (1.0 / m_true) - mean * mean, 0.0)
                scale = jax.lax.rsqrt(var + BN_EPS) * g_ref[...]
                y = acc * scale + (b_ref[...] - mean * scale)
            else:
                y = acc + bias_ref[...]
            if act == "hardswish":                 # x * relu6(x + 3) / 6
                y = y * jnp.clip(y + 3.0, 0.0, 6.0) * (1.0 / 6.0)
            elif act == "leaky":                   # LeakyReLU(0.1)
                y = jnp.where(y >= 0.0, y, 0.1 * y)
            if has_skip:
                y = y + skip_ref[...].astype(jnp.float32)
            o_ref[...] = y.astype(o_ref.dtype)

        prod = jnp.dot(a_refs[0][...], w_refs[0][...],
                       preferred_element_type=jnp.float32)
        for a_r, w_r in zip(a_refs[1:], w_refs[1:]):
            prod += jnp.dot(a_r[...], w_r[...],
                            preferred_element_type=jnp.float32)

        if not multi_k:
            finish(prod)
        else:
            acc_ref = refs[idx]
            k = pl.program_id(1)

            @pl.when(k == 0)
            def _():
                acc_ref[...] = prod                # direct write, no zero+RMW

            @pl.when(k > 0)
            def _():
                acc_ref[...] += prod

            @pl.when(k == pl.num_programs(1) - 1)
            def _():
                finish(acc_ref[...])

    return kernel


def _make_mm_stats_kernel(*, n_seg, want_stats, multi_k):
    """Two-phase kernel A: M/N/K-tiled matmul emitting the pre-BN bf16 tile
    plus per-(M tile, channel) sum / sum-of-squares.  Grid = (j, mi, k)."""

    def kernel(*refs):
        a_refs = refs[0:2 * n_seg:2]
        w_refs = refs[1:2 * n_seg:2]
        idx = 2 * n_seg
        o_ref = refs[idx]
        idx += 1
        st_ref = None
        if want_stats:
            st_ref = refs[idx]
            idx += 1

        def finish(acc):
            o_ref[...] = acc.astype(o_ref.dtype)
            if want_stats:
                s = jnp.sum(acc, axis=0, keepdims=True)
                ss = jnp.sum(acc * acc, axis=0, keepdims=True)
                st_ref[0] = jnp.concatenate([s, ss], axis=0)

        prod = jnp.dot(a_refs[0][...], w_refs[0][...],
                       preferred_element_type=jnp.float32)
        for a_r, w_r in zip(a_refs[1:], w_refs[1:]):
            prod += jnp.dot(a_r[...], w_r[...],
                            preferred_element_type=jnp.float32)

        if not multi_k:
            finish(prod)
        else:
            acc_ref = refs[idx]
            k = pl.program_id(2)

            @pl.when(k == 0)
            def _():
                acc_ref[...] = prod

            @pl.when(k > 0)
            def _():
                acc_ref[...] += prod

            @pl.when(k == pl.num_programs(2) - 1)
            def _():
                finish(acc_ref[...])

    return kernel


def _make_apply_kernel(*, act, has_skip):
    """Two-phase kernel B: y = x*scale + shift, activation, optional skip."""

    def kernel(*refs):
        x_ref, sc_ref, sh_ref = refs[0], refs[1], refs[2]
        idx = 3
        skip_ref = None
        if has_skip:
            skip_ref = refs[idx]
            idx += 1
        o_ref = refs[idx]
        y = x_ref[...].astype(jnp.float32) * sc_ref[...] + sh_ref[...]
        if act == "hardswish":
            y = y * jnp.clip(y + 3.0, 0.0, 6.0) * (1.0 / 6.0)
        elif act == "leaky":
            y = jnp.where(y >= 0.0, y, 0.1 * y)
        if has_skip:
            y = y + skip_ref[...].astype(jnp.float32)
        o_ref[...] = y.astype(o_ref.dtype)

    return kernel


# --------------------------------------------------------------------------
# fused matmul wrapper
# --------------------------------------------------------------------------

def fused_matmul(segments, *, gamma=None, beta=None, bias=None, act="none",
                 skip=None, out_dtype=jnp.bfloat16,
                 force_two_phase=False, tile_override=None):
    """sum_i A_i[M,K] @ W_i[K,N] fused with train-mode BN (gamma/beta) or a
    bias add, activation, and an optional residual add.  Picks either the
    whole-M fused kernel or the M-tiled two-phase path based on a
    per-generation VMEM budget."""
    M, K = segments[0][0].shape
    N = segments[0][1].shape[1]
    n_seg = len(segments)
    for a_i, w_i in segments:
        assert a_i.shape == (M, K) and w_i.shape == (K, N)
    use_bn = gamma is not None
    has_skip = skip is not None
    budget, vmem_limit = _vmem_caps()

    # ---------------- tile selection ----------------
    Mp8 = _round_up(M, _SUB)
    if tile_override is not None:                 # test hook (two-phase only)
        tm, tk, tn = tile_override
        Kp = _round_up(K, tk)
        Np = _round_up(N, tn)
        fused = False
    else:
        Np = _round_up(N, _LANE)
        tn = _pick_tn(Np, _TN_CAP)
        tk, Kp = _pick_tk(K, _TK_CAP)

        def vmem_need(m):                         # conservative block estimate
            b = 4 * n_seg * m * tk + 4 * n_seg * tk * tn    # A, W (bf16, 2 bufs)
            b += 4 * m * tn                                 # out (bf16, 2 bufs)
            b += 4 * m * tn                                 # f32 accumulator
            if has_skip:
                b += 4 * m * tn                             # skip (bf16, 2 bufs)
            return b

        fused = (not force_two_phase) and vmem_need(Mp8) <= budget
        if fused:
            tm = Mp8
        else:
            tm = _SUB
            for cand in (4096, 2048, 1024, 512, 256, 128, 64, 32, 16, 8):
                if vmem_need(cand) <= budget:
                    tm = cand
                    break
            tm = min(tm, Mp8)
    Mp = _round_up(M, tm)
    n_j, n_mt, n_k = Np // tn, Mp // tm, Kp // tk
    multi_k = n_k > 1

    # ---------------- operands (pad only when required) ----------------
    a_list = [_pad2(a_i.astype(jnp.bfloat16), Mp, Kp) for a_i, _ in segments]
    w_list = [_pad2(w_i.astype(jnp.bfloat16), Kp, Np) for _, w_i in segments]
    if use_bn:
        g_p = _pad2(gamma.reshape(1, N).astype(jnp.float32), 1, Np)
        b_p = _pad2(beta.reshape(1, N).astype(jnp.float32), 1, Np)
    else:
        bias_p = _pad2(bias.reshape(1, N).astype(jnp.float32), 1, Np)
    skip_p = None
    if has_skip:
        skip_p = _pad2(skip.astype(jnp.bfloat16), Mp, Np)

    if fused:
        # -------- one-pass fused kernel (M resident in VMEM) --------
        inputs, in_specs = [], []
        for a_p, w_p in zip(a_list, w_list):
            inputs += [a_p, w_p]
            in_specs += [pl.BlockSpec((Mp, tk), lambda j, k: (0, k)),
                         pl.BlockSpec((tk, tn), lambda j, k: (k, j))]
        if use_bn:
            inputs += [g_p, b_p]
            in_specs += [pl.BlockSpec((1, tn), lambda j, k: (0, j))] * 2
        else:
            inputs.append(bias_p)
            in_specs.append(pl.BlockSpec((1, tn), lambda j, k: (0, j)))
        if has_skip:
            inputs.append(skip_p)
            in_specs.append(pl.BlockSpec((Mp, tn), lambda j, k: (0, j)))
        out = pl.pallas_call(
            _make_fused_kernel(n_seg=n_seg, act=act, use_bn=use_bn,
                               has_skip=has_skip, m_true=float(M),
                               multi_k=multi_k),
            out_shape=jax.ShapeDtypeStruct((Mp, Np), out_dtype),
            grid=(n_j, n_k),
            in_specs=in_specs,
            out_specs=pl.BlockSpec((Mp, tn), lambda j, k: (0, j)),
            scratch_shapes=([pltpu.VMEM((Mp, tn), jnp.float32)]
                            if multi_k else []),
            compiler_params=pltpu.CompilerParams(
                dimension_semantics=("parallel", "arbitrary"),
                vmem_limit_bytes=vmem_limit),
        )(*inputs)
    else:
        # -------- two-phase path: matmul+stats, then scale/shift apply --------
        inputs, in_specs = [], []
        for a_p, w_p in zip(a_list, w_list):
            inputs += [a_p, w_p]
            in_specs += [pl.BlockSpec((tm, tk), lambda j, mi, k: (mi, k)),
                         pl.BlockSpec((tk, tn), lambda j, mi, k: (k, j))]
        out_shapes = [jax.ShapeDtypeStruct((Mp, Np), jnp.bfloat16)]
        out_specs = [pl.BlockSpec((tm, tn), lambda j, mi, k: (mi, j))]
        if use_bn:
            out_shapes.append(jax.ShapeDtypeStruct((n_mt, 2, Np), jnp.float32))
            out_specs.append(
                pl.BlockSpec((1, 2, tn), lambda j, mi, k: (mi, 0, j)))
        res = pl.pallas_call(
            _make_mm_stats_kernel(n_seg=n_seg, want_stats=use_bn,
                                  multi_k=multi_k),
            out_shape=tuple(out_shapes),
            grid=(n_j, n_mt, n_k),
            in_specs=in_specs,
            out_specs=tuple(out_specs),
            scratch_shapes=([pltpu.VMEM((tm, tn), jnp.float32)]
                            if multi_k else []),
            compiler_params=pltpu.CompilerParams(
                dimension_semantics=("parallel", "parallel", "arbitrary"),
                vmem_limit_bytes=vmem_limit),
        )(*inputs)
        pre = res[0]
        if use_bn:
            stats = res[1]
            s = jnp.sum(stats[:, 0, :], axis=0)
            ss = jnp.sum(stats[:, 1, :], axis=0)
            mean = s / float(M)                    # padded rows contribute 0
            var = jnp.maximum(ss / float(M) - mean * mean, 0.0)
            scale = g_p.reshape(Np) * jax.lax.rsqrt(var + BN_EPS)
            shift = b_p.reshape(Np) - mean * scale
        else:
            scale = jnp.ones((Np,), jnp.float32)
            shift = bias_p.reshape(Np)
        scale = scale.reshape(1, Np)
        shift = shift.reshape(1, Np)

        inputs_b = [pre, scale, shift]
        specs_b = [pl.BlockSpec((tm, tn), lambda mi, j: (mi, j)),
                   pl.BlockSpec((1, tn), lambda mi, j: (0, j)),
                   pl.BlockSpec((1, tn), lambda mi, j: (0, j))]
        if has_skip:
            inputs_b.append(skip_p)
            specs_b.append(pl.BlockSpec((tm, tn), lambda mi, j: (mi, j)))
        out = pl.pallas_call(
            _make_apply_kernel(act=act, has_skip=has_skip),
            out_shape=jax.ShapeDtypeStruct((Mp, Np), out_dtype),
            grid=(n_mt, n_j),
            in_specs=specs_b,
            out_specs=pl.BlockSpec((tm, tn), lambda mi, j: (mi, j)),
            compiler_params=pltpu.CompilerParams(
                dimension_semantics=("parallel", "parallel"),
                vmem_limit_bytes=vmem_limit),
        )(*inputs_b)

    if (Mp, Np) != (M, N):
        out = out[:M, :N]
    return out


# --------------------------------------------------------------------------
# conv glue (im2col)
# --------------------------------------------------------------------------

def im2col(x, k, s, pad):
    # x: (N, H, W, C) -> A: (N*Ho*Wo, k*k*C), K ordered (kh, kw, cin).
    N, H, W, C = x.shape
    xp = jnp.pad(x, ((0, 0), (pad, pad), (pad, pad), (0, 0)))
    Ho = (H + 2 * pad - k) // s + 1
    Wo = (W + 2 * pad - k) // s + 1
    cols = [xp[:, i:i + s * Ho:s, j:j + s * Wo:s, :]
            for i in range(k) for j in range(k)]
    A = jnp.concatenate(cols, axis=-1).reshape(N * Ho * Wo, k * k * C)
    return A, (Ho, Wo)


def _w_to_mat(w):
    # PyTorch OIHW -> (kh*kw*Cin, Cout), matching the im2col K ordering.
    c2 = w.shape[0]
    return jnp.transpose(w, (2, 3, 1, 0)).reshape(-1, c2)


def conv_module(x, p, k, s=1, pad=0, act=True, skip=None):
    # Conv(c1, c2, k, s, p) = Conv2d + BatchNorm2d(train stats) + Hardswish.
    # (Conv2d bias dropped: cancelled by the train-mode BN mean subtraction.)
    N, H, W, C = x.shape
    if k == 1:
        A, (Ho, Wo) = x.reshape(N * H * W, C), (H, W)
    else:
        A, (Ho, Wo) = im2col(x, k, s, pad)
    c2 = p["w"].shape[0]
    y = fused_matmul(
        [(A, _w_to_mat(p["w"]))],
        gamma=p["gamma"], beta=p["beta"],
        act="hardswish" if act else "none",
        skip=None if skip is None else skip.reshape(N * Ho * Wo, c2))
    return y.reshape(N, Ho, Wo, c2)


# --------------------------------------------------------------------------
# model blocks
# --------------------------------------------------------------------------

def focus(x, p):
    cat = jnp.concatenate(
        [x[:, ::2, ::2, :], x[:, 1::2, ::2, :],
         x[:, ::2, 1::2, :], x[:, 1::2, 1::2, :]], axis=-1)
    return conv_module(cat, p, k=3, pad=1)


def resblock(x, blocks):
    for blk in blocks:
        h = conv_module(x, blk["cv1"], k=1)
        x = conv_module(h, blk["cv2"], k=3, pad=1, skip=x)   # fused residual
    return x


def bottleneck_csp(x, p):
    c_ = p["cv1"]["w"].shape[0]
    y = conv_module(x, p["cv1"], k=1)
    for bp in p["m"]:                       # Bottleneck(e=1.0, shortcut)
        h = conv_module(y, bp["cv1"], k=1)
        y = conv_module(h, bp["cv2"], k=3, pad=1, skip=y)    # fused residual

    N, H, W, _ = y.shape
    M = N * H * W
    # cv3 / cv2 (1x1, bias-free), each fused with its slice of the shared
    # BatchNorm + LeakyReLU(0.1).
    y1 = fused_matmul([(y.reshape(M, c_), _w_to_mat(p["cv3_w"]))],
                      gamma=p["bn_gamma"][:c_], beta=p["bn_beta"][:c_],
                      act="leaky")
    y2 = fused_matmul([(x.reshape(M, -1), _w_to_mat(p["cv2_w"]))],
                      gamma=p["bn_gamma"][c_:], beta=p["bn_beta"][c_:],
                      act="leaky")
    # cv4 (1x1 conv + BN + Hardswish) fused with the channel concat:
    # z = y1 @ W4[:c_] + y2 @ W4[c_:]  (channel order matches torch.cat).
    c2 = p["cv4"]["w"].shape[0]
    w4 = _w_to_mat(p["cv4"]["w"])           # (2*c_, c2)
    z = fused_matmul([(y1, w4[:c_]), (y2, w4[c_:])],
                     gamma=p["cv4"]["gamma"], beta=p["cv4"]["beta"],
                     act="hardswish")
    return z.reshape(N, H, W, c2)


def cspdarknet_medium(x_nchw, params):
    x = jnp.transpose(x_nchw, (0, 2, 3, 1)).astype(jnp.bfloat16)  # NCHW->NHWC
    # layer_1
    x = focus(x, params["l1_focus"])
    x = resblock(x, params["l1_res"])
    # layer_2 .. layer_5
    x = conv_module(x, params["l2_conv"], k=3, s=2, pad=1)
    x = bottleneck_csp(x, params["l2_csp"])
    x = conv_module(x, params["l3_conv"], k=3, s=2, pad=1)
    x = bottleneck_csp(x, params["l3_csp"])
    x = conv_module(x, params["l4_conv"], k=3, s=2, pad=1)
    x = bottleneck_csp(x, params["l4_csp"])
    x = conv_module(x, params["l5_conv"], k=3, s=2, pad=1)
    x = bottleneck_csp(x, params["l5_csp"])
    # AdaptiveAvgPool2d((1,1)) + flatten
    x = jnp.mean(x.astype(jnp.float32), axis=(1, 2))              # (N, 1024)
    # fc (bias mode of the same tiled kernel, f32 output)
    return fused_matmul([(x, params["fc_w"])], bias=params["fc_b"],
                        act="none", out_dtype=jnp.float32)


# --------------------------------------------------------------------------
# parameter init
# --------------------------------------------------------------------------

def _init_conv_module(key, c1, c2, k):
    k1, k2, k3 = jax.random.split(key, 3)
    fan_in = c1 * k * k
    return {
        "w": jax.random.normal(k1, (c2, c1, k, k), jnp.float32) / jnp.sqrt(fan_in),
        "gamma": 1.0 + 0.1 * jax.random.normal(k2, (c2,), jnp.float32),
        "beta": 0.1 * jax.random.normal(k3, (c2,), jnp.float32),
    }


def _init_bottleneck(key, c):
    k1, k2 = jax.random.split(key)
    return {"cv1": _init_conv_module(k1, c, c, 1),
            "cv2": _init_conv_module(k2, c, c, 3)}


def _init_csp(key, c1, c2, n):
    c_ = c2 // 2
    keys = jax.random.split(key, 5 + n)
    return {
        "cv1": _init_conv_module(keys[0], c1, c_, 1),
        "cv2_w": jax.random.normal(keys[1], (c_, c1, 1, 1), jnp.float32) / jnp.sqrt(c1),
        "cv3_w": jax.random.normal(keys[2], (c_, c_, 1, 1), jnp.float32) / jnp.sqrt(c_),
        "cv4": _init_conv_module(keys[3], 2 * c_, c2, 1),
        "bn_gamma": 1.0 + 0.1 * jax.random.normal(keys[4], (2 * c_,), jnp.float32),
        "bn_beta": jnp.zeros((2 * c_,), jnp.float32),
        "m": [_init_bottleneck(keys[5 + i], c_) for i in range(n)],
    }


def init_params(key, num_classes=1000):
    keys = jax.random.split(key, 12)
    return {
        "l1_focus": _init_conv_module(keys[0], 12, 64, 3),
        "l1_res": [{"cv1": _init_conv_module(keys[1], 64, 32, 1),
                    "cv2": _init_conv_module(keys[2], 32, 64, 3)}],
        "l2_conv": _init_conv_module(keys[3], 64, 128, 3),
        "l2_csp": _init_csp(keys[4], 128, 128, 2),
        "l3_conv": _init_conv_module(keys[5], 128, 256, 3),
        "l3_csp": _init_csp(keys[6], 256, 256, 6),
        "l4_conv": _init_conv_module(keys[7], 256, 512, 3),
        "l4_csp": _init_csp(keys[8], 512, 512, 6),
        "l5_conv": _init_conv_module(keys[9], 512, 1024, 3),
        "l5_csp": _init_csp(keys[10], 1024, 1024, 2),
        "fc_w": jax.random.normal(keys[11], (1024, num_classes), jnp.float32) / 32.0,
        "fc_b": jnp.zeros((num_classes,), jnp.float32),
    }


# --------------------------------------------------------------------------
# self-test: the toy input only hits the fused path, so explicitly exercise
# the M-tiled two-phase path (and padded-M stat masking) against a jnp ref.
# --------------------------------------------------------------------------

def _self_test():
    key = jax.random.PRNGKey(42)
    k1, k2, k3, k4, k5 = jax.random.split(key, 5)
    M, K, N = 200, 256, 256
    a = jax.random.normal(k1, (M, K), jnp.float32)
    w = jax.random.normal(k2, (K, N), jnp.float32) / 16.0
    g = 1.0 + 0.1 * jax.random.normal(k3, (N,), jnp.float32)
    b = 0.1 * jax.random.normal(k4, (N,), jnp.float32)
    sk = jax.random.normal(k5, (M, N), jnp.float32)

    acc = jnp.dot(a.astype(jnp.bfloat16).astype(jnp.float32),
                  w.astype(jnp.bfloat16).astype(jnp.float32))
    mean = jnp.mean(acc, axis=0)
    var = jnp.var(acc, axis=0)
    y = (acc - mean) * (g * jax.lax.rsqrt(var + BN_EPS)) + b
    y = y * jnp.clip(y + 3.0, 0.0, 6.0) / 6.0
    want = y + sk.astype(jnp.bfloat16).astype(jnp.float32)

    got_fused = fused_matmul([(a, w)], gamma=g, beta=b, act="hardswish",
                             skip=sk, out_dtype=jnp.float32)
    got_tiled = fused_matmul([(a, w)], gamma=g, beta=b, act="hardswish",
                             skip=sk, out_dtype=jnp.float32,
                             force_two_phase=True,
                             tile_override=(128, 128, 128))
    assert float(jnp.max(jnp.abs(got_fused - want))) < 0.15, "fused path mismatch"
    assert float(jnp.max(jnp.abs(got_tiled - want))) < 0.15, "two-phase path mismatch"


# --------------------------------------------------------------------------
# main
# --------------------------------------------------------------------------

if __name__ == "__main__":
    _vmem_caps()          # prime the hardware query outside of tracing
    _self_test()

    key = jax.random.PRNGKey(0)
    pkey, xkey = jax.random.split(key)
    params = init_params(pkey, num_classes=1000)

    # small NCHW input consistent with the module (3-channel image)
    x = jax.random.normal(xkey, (2, 3, 32, 32), jnp.float32)

    fwd = jax.jit(cspdarknet_medium)
    out = fwd(x, params)
    jax.block_until_ready(out)
    assert out.shape == (2, 1000), out.shape
    assert bool(jnp.all(jnp.isfinite(out)))
    print("KERNEL_OK")
</pallas_src>

<mosaic_0001>
module attributes {stable_mosaic.version = 11 : i64} {
  func.func @kernel(%arg0: i32, %arg1: i32, %arg2: memref<200x256xbf16, #tpu.memory_space<vmem>>, %arg3: memref<256x256xbf16, #tpu.memory_space<vmem>>, %arg4: memref<1x256xf32, #tpu.memory_space<vmem>>, %arg5: memref<1x256xf32, #tpu.memory_space<vmem>>, %arg6: memref<200x256xbf16, #tpu.memory_space<vmem>>, %arg7: memref<200x256xf32, #tpu.memory_space<vmem>>) attributes {dimension_semantics = [#tpu.dimension_semantics<parallel>, #tpu.dimension_semantics<arbitrary>], iteration_bounds = array<i64: 1, 1>, scalar_prefetch = 0 : i64, scratch_operands = 0 : i64, tpu.core_type = #tpu.core_type<tc>, window_params = [{transform_indices = @transform_0, window_bounds = array<i64: 200, 256>}, {transform_indices = @transform_1, window_bounds = array<i64: 256, 256>}, {transform_indices = @transform_2, window_bounds = array<i64: 1, 256>}, {transform_indices = @transform_3, window_bounds = array<i64: 1, 256>}, {transform_indices = @transform_4, window_bounds = array<i64: 200, 256>}, {transform_indices = @transform_5, window_bounds = array<i64: 200, 256>}]} {
    %c0 = arith.constant 0 : index
    %c0_0 = arith.constant 0 : index
    %0 = vector.load %arg2[%c0, %c0_0] : memref<200x256xbf16, #tpu.memory_space<vmem>>, vector<200x256xbf16>
    %c0_1 = arith.constant 0 : index
    %c0_2 = arith.constant 0 : index
    %1 = vector.load %arg3[%c0_1, %c0_2] : memref<256x256xbf16, #tpu.memory_space<vmem>>, vector<256x256xbf16>
    %cst = arith.constant dense<0.000000e+00> : vector<200x256xf32>
    %2 = tpu.matmul %0, %1, %cst {dimension_numbers = #tpu.dot_dimension_numbers<[1], [0], [0], [1], [0, 0, 1, 1], [], []>} : vector<200x256xbf16>, vector<256x256xbf16>, vector<200x256xf32> -> vector<200x256xf32>
    %cst_3 = arith.constant dense<0.000000e+00> : vector<256xf32>
    %3 = vector.multi_reduction <add>, %2, %cst_3 [0] : vector<200x256xf32> to vector<256xf32>
    %4 = vector.shape_cast %3 : vector<256xf32> to vector<1x256xf32>
    %5 = arith.mulf %2, %2 : vector<200x256xf32>
    %cst_4 = arith.constant dense<0.000000e+00> : vector<256xf32>
    %6 = vector.multi_reduction <add>, %5, %cst_4 [0] : vector<200x256xf32> to vector<256xf32>
    %7 = vector.shape_cast %6 : vector<256xf32> to vector<1x256xf32>
    %cst_5 = arith.constant 5.000000e-03 : f32
    %8 = vector.broadcast %cst_5 : f32 to vector<1x256xf32>
    %9 = arith.mulf %4, %8 : vector<1x256xf32>
    %cst_6 = arith.constant 5.000000e-03 : f32
    %10 = vector.broadcast %cst_6 : f32 to vector<1x256xf32>
    %11 = arith.mulf %7, %10 : vector<1x256xf32>
    %12 = arith.mulf %9, %9 : vector<1x256xf32>
    %13 = arith.subf %11, %12 : vector<1x256xf32>
    %cst_7 = arith.constant 0.000000e+00 : f32
    %14 = vector.broadcast %cst_7 : f32 to vector<1x256xf32>
    %15 = arith.maximumf %13, %14 : vector<1x256xf32>
    %cst_8 = arith.constant 9.99999974E-6 : f32
    %16 = vector.broadcast %cst_8 : f32 to vector<1x256xf32>
    %17 = arith.addf %15, %16 : vector<1x256xf32>
    %18 = math.rsqrt %17 : vector<1x256xf32>
    %c0_9 = arith.constant 0 : index
    %c0_10 = arith.constant 0 : index
    %19 = vector.load %arg4[%c0_9, %c0_10] : memref<1x256xf32, #tpu.memory_space<vmem>>, vector<1x256xf32>
    %20 = arith.mulf %18, %19 : vector<1x256xf32>
    %21 = vector.broadcast %20 : vector<1x256xf32> to vector<200x256xf32>
    %22 = arith.mulf %2, %21 : vector<200x256xf32>
    %c0_11 = arith.constant 0 : index
    %c0_12 = arith.constant 0 : index
    %23 = vector.load %arg5[%c0_11, %c0_12] : memref<1x256xf32, #tpu.memory_space<vmem>>, vector<1x256xf32>
    %24 = arith.mulf %9, %20 : vector<1x256xf32>
    %25 = arith.subf %23, %24 : vector<1x256xf32>
    %26 = vector.broadcast %25 : vector<1x256xf32> to vector<200x256xf32>
    %27 = arith.addf %22, %26 : vector<200x256xf32>
    %cst_13 = arith.constant 3.000000e+00 : f32
    %28 = vector.broadcast %cst_13 : f32 to vector<200x256xf32>
    %29 = arith.addf %27, %28 : vector<200x256xf32>
    %cst_14 = arith.constant 0.000000e+00 : f32
    %cst_15 = arith.constant 6.000000e+00 : f32
    %30 = vector.broadcast %cst_14 : f32 to vector<200x256xf32>
    %31 = arith.maximumf %30, %29 : vector<200x256xf32>
    %32 = vector.broadcast %cst_15 : f32 to vector<200x256xf32>
    %33 = arith.minimumf %32, %31 : vector<200x256xf32>
    %34 = arith.mulf %27, %33 : vector<200x256xf32>
    %cst_16 = arith.constant 0.166666672 : f32
    %35 = vector.broadcast %cst_16 : f32 to vector<200x256xf32>
    %36 = arith.mulf %34, %35 : vector<200x256xf32>
    %c0_17 = arith.constant 0 : index
    %c0_18 = arith.constant 0 : index
    %37 = vector.load %arg6[%c0_17, %c0_18] : memref<200x256xbf16, #tpu.memory_space<vmem>>, vector<200x256xbf16>
    %38 = arith.extf %37 : vector<200x256xbf16> to vector<200x256xf32>
    %39 = arith.addf %36, %38 : vector<200x256xf32>
    %c0_19 = arith.constant 0 : index
    %c0_20 = arith.constant 0 : index
    %40 = vector.load %arg7[%c0_19, %c0_20] : memref<200x256xf32, #tpu.memory_space<vmem>>, vector<200x256xf32>
    tpu.vector_store %arg7[%c0_19, %c0_20], %39 {strides = array<i32>} : memref<200x256xf32, #tpu.memory_space<vmem>>, vector<200x256xf32>,
    return
  }
  func.func @transform_0(%arg0: i32, %arg1: i32) -> (i32, i32) {
    %c0_i32 = arith.constant 0 : i32
    %c0_i32_0 = arith.constant 0 : i32
    return %c0_i32, %arg1 : i32, i32
  }
  func.func @transform_1(%arg0: i32, %arg1: i32) -> (i32, i32) {
    %c0_i32 = arith.constant 0 : i32
    return %arg1, %arg0 : i32, i32
  }
  func.func @transform_2(%arg0: i32, %arg1: i32) -> (i32, i32) {
    %c0_i32 = arith.constant 0 : i32
    %c0_i32_0 = arith.constant 0 : i32
    return %c0_i32, %arg0 : i32, i32
  }
  func.func @transform_3(%arg0: i32, %arg1: i32) -> (i32, i32) {
    %c0_i32 = arith.constant 0 : i32
    %c0_i32_0 = arith.constant 0 : i32
    return %c0_i32, %arg0 : i32, i32
  }
  func.func @transform_4(%arg0: i32, %arg1: i32) -> (i32, i32) {
    %c0_i32 = arith.constant 0 : i32
    %c0_i32_0 = arith.constant 0 : i32
    return %c0_i32, %arg0 : i32, i32
  }
  func.func @transform_5(%arg0: i32, %arg1: i32) -> (i32, i32) {
    %c0_i32 = arith.constant 0 : i32
    %c0_i32_0 = arith.constant 0 : i32
    return %c0_i32, %arg0 : i32, i32
  }
}

</mosaic_0001>

<bundles_post_ra>
// kernel: tpu_custom_call.1
= control target key start
LH: loop header
LB: loop body
LE: loop exit
PB: predicated region body
PF: predicated region fallthrough
CT: control target
= control target key end

     0   :  { %10 = vsyncpa [#allocation3], 0  ;;  %s2863_s0 = inlined_call_operand.hbm [shape: bf16[200,256], index: 0, kind: input, shape index: {}]   ;;  %s2864_s1 = inlined_call_operand.hbm [shape: bf16[256,256], index: 1, kind: input, shape index: {}]   ;;  %s2865_s2 = inlined_call_operand.vmem [shape: f32[1,256], index: 2, kind: input, shape index: {}]   ;;  %s2866_s3 = inlined_call_operand.vmem [shape: f32[1,256], index: 3, kind: input, shape index: {}]   ;;  %s2867_s4 = inlined_call_operand.hbm [shape: bf16[200,256], index: 4, kind: input, shape index: {}]   ;;  %s2868_s5 = inlined_call_operand.hbm [shape: f32[200,256], index: 5, kind: output, shape index: {}]  }
   0x1   :  { %11 = vsyncpa [#allocation6], 0 }
   0x2   :  { %12 = vsyncpa [#allocation4], 0  ;;  %s1632_s18 = smov [#allocation5]   ;;  %s1633_s20 = smov [#allocation2]  }
   0x3   :  { %s30_s19 = sshll.u32 %s1632_s18, 4  ;;  %s18_s21 = sshll.u32 %s1633_s20, 4  ;;  %s31_s19 = int_to_ptr.vmem [resolvable:$true] %s30_s19  ;;  %s1671_s21 = int_to_ptr.vmem [resolvable:$true] %s18_s21 }
   0x4   :  { %s1538_s24 = scalar_lea.hbm %s2864_s1, 4096 }
   0x5   :  { %p1539_p0 = scmp.ne.s32.totalorder %s2864_s1, %s1538_s24  ;;  %p1542_p1 = scmp.lt.u32.totalorder %s1538_s24, %s2864_s1 }
   0x7   :  { %p1544_p2 = pnand %p1542_p1, %p1539_p0 }
   0x9   :  { %1547 = shalt.err (!%p1544_p2)
}
   0xa   :  { %s1548_s29 = scalar_lea.vmem %s31_s19, 4096  ;;  %p1553_p4 = scmp.lt.s32.totalorder %s31_s19, %s31_s19 }
   0xb   :  { %p1549_p3 = scmp.ne.s32.totalorder %s31_s19, %s1548_s29  ;;  %p1554_p5 = scmp.lt.s32.totalorder %s1548_s29, %s1548_s29 }
   0xd   :  { %p1555_p6 = por %p1554_p5, %p1553_p4 }
   0xf   :  { %p1556_p7 = pnand %p1555_p6, %p1549_p3 }
  0x11   :  { %1559 = shalt.err (!%p1556_p7)
}
  0x12   :  { %s1634_s30 = smov 128   ;;  %s1635_s6 = smov 8  }
  0x13   :  { %36 = dma.hbm_to_vmem [thread:$0]  %s2864_s1, 4096, %s31_s19, [#allocation6], %s1634_s30, %s1634_s30, %s1635_s6  }
  0x14   :  { %s1560_s11 = scalar_lea.hbm %s2863_s0, 3200 }
  0x15   :  { %p1561_p8 = scmp.ne.s32.totalorder %s2863_s0, %s1560_s11  ;;  %p1564_p9 = scmp.lt.u32.totalorder %s1560_s11, %s2863_s0 }
  0x17   :  { %p1566_p10 = pnand %p1564_p9, %p1561_p8 }
  0x19   :  { %1569 = shalt.err (!%p1566_p10)
}
  0x1a   :  { %s1570_s16 = scalar_lea.vmem %s1671_s21, 3200  ;;  %p1575_p12 = scmp.lt.s32.totalorder %s1671_s21, %s1671_s21 }
  0x1b   :  { %p1571_p11 = scmp.ne.s32.totalorder %s1671_s21, %s1570_s16  ;;  %p1576_p13 = scmp.lt.s32.totalorder %s1570_s16, %s1570_s16 }
  0x1d   :  { %p1577_p0 = por %p1576_p13, %p1575_p12 }
  0x1f   :  { %p1578_p1 = pnand %p1577_p0, %p1571_p11 }
  0x21   :  { %1581 = shalt.err (!%p1578_p1)
}
  0x22   :  { %24 = dma.hbm_to_vmem [thread:$0]  %s2863_s0, 3200, %s1671_s21, [#allocation3], %s1634_s30, %s1634_s30, %s1635_s6  }
  0x23   :  { %s1636_s18 = smov [#allocation7]   ;;  %s1582_s23 = scalar_lea.hbm %s2867_s4, 3200 }
  0x24   :  { %s46_s19 = sshll.u32 %s1636_s18, 4  ;;  %p1583_p2 = scmp.ne.s32.totalorder %s2867_s4, %s1582_s23  ;;  %s47_s19 = int_to_ptr.vmem [resolvable:$true] %s46_s19 }
  0x25   :  { %p1586_p3 = scmp.lt.u32.totalorder %s1582_s23, %s2867_s4 }
  0x27   :  { %p1588_p4 = pnand %p1586_p3, %p1583_p2 }
  0x29   :  { %1591 = shalt.err (!%p1588_p4)
}
  0x2a   :  { %s1592_s28 = scalar_lea.vmem %s47_s19, 3200  ;;  %p1597_p6 = scmp.lt.s32.totalorder %s47_s19, %s47_s19 }
  0x2b   :  { %p1593_p5 = scmp.ne.s32.totalorder %s47_s19, %s1592_s28  ;;  %p1598_p7 = scmp.lt.s32.totalorder %s1592_s28, %s1592_s28 }
  0x2d   :  { %p1599_p8 = por %p1598_p7, %p1597_p6 }
  0x2f   :  { %p1600_p9 = pnand %p1599_p8, %p1593_p5 }
  0x31   :  { %1603 = shalt.err (!%p1600_p9)
}
  0x32   :  { %52 = dma.hbm_to_vmem [thread:$0]  %s2867_s4, 3200, %s47_s19, [#allocation6], %s1634_s30, %s1634_s30, %s1635_s6  }
  0x33   :  { %1626 = dma.done.wait [#allocation3], 3200  }
  0x34   :  { %1627 = vsyncadd [#allocation3], 4294964096 }
  0x35   :  { %1628 = dma.done.wait [#allocation6], 7296  }
  0x36   :  { %1629 = vsyncadd [#allocation6], 4294960000  ;;  %v1448_v0 = vld [vmem:[#allocation5 + $0x4] ss:$8 sps:$4 sm:$0xff]   ;;  %v1450_v1 = vld [vmem:[#allocation5] ss:$8 sps:$4 sm:$0xff]  }
  0x37   :  { %406 = vmatprep.subr.bf16.mxu0 %v1448_v0  ;;  %v1451_v2 = vld [vmem:[#allocation5 + $0x14] ss:$8 sps:$4 sm:$0xff]   ;;  %1407 = vmatprep.subr.bf16.mxu1 %v1448_v0  ;;  %v1453_v3 = vld [vmem:[#allocation5 + $0x10] ss:$8 sps:$4 sm:$0xff]   ;;  %v1454_v4 = vld [vmem:[#allocation5 + $0x24] ss:$8 sps:$4 sm:$0xff]  }
  0x38   :  { %407 = vmatpush1.bf16.msra.mxu0 %v1450_v1  ;;  %1423 = vmatpush1.bf16.msra.mxu1 %v1450_v1  ;;  %v1456_v5 = vld [vmem:[#allocation5 + $0x20] ss:$8 sps:$4 sm:$0xff]   ;;  %v1457_v6 = vld [vmem:[#allocation5 + $0x34] ss:$8 sps:$4 sm:$0xff]   ;;  %v1459_v7 = vld [vmem:[#allocation5 + $0x30] ss:$8 sps:$4 sm:$0xff]  }
  0x39   :  { %408 = vmatprep.subr.bf16.mxu0 %v1451_v2  ;;  %1408 = vmatprep.subr.bf16.mxu1 %v1451_v2  ;;  %v1460_v8 = vld [vmem:[#allocation5 + $0x44] ss:$8 sps:$4 sm:$0xff]   ;;  %v1462_v9 = vld [vmem:[#allocation5 + $0x40] ss:$8 sps:$4 sm:$0xff]   ;;  %v1463_v10 = vld [vmem:[#allocation5 + $0x54] ss:$8 sps:$4 sm:$0xff]  }
  0x3a   :  { %v1465_v11 = vld [vmem:[#allocation5 + $0x50] ss:$8 sps:$4 sm:$0xff]   ;;  %v1466_v12 = vld [vmem:[#allocation5 + $0x64] ss:$8 sps:$4 sm:$0xff]   ;;  %v1468_v14 = vld [vmem:[#allocation5 + $0x60] ss:$8 sps:$4 sm:$0xff]  }
  0x3b   :  { %v1498_v13 = vld [vmem:[#allocation2 + $0x4] ss:$8 sps:$4 sm:$0xff]   ;;  %v1471_v16 = vld [vmem:[#allocation5 + $0x70] ss:$8 sps:$4 sm:$0xff]   ;;  %v1510_v17 = vld [vmem:[#allocation2 + $0x74] ss:$8 sps:$4 sm:$0xff]  }
  0x3c   :  { %409 = vmatpush1.bf16.msra.mxu0 %v1453_v3  ;;  %1424 = vmatpush1.bf16.msra.mxu1 %v1453_v3  ;;  %v1469_v15 = vld [vmem:[#allocation5 + $0x74] ss:$8 sps:$4 sm:$0xff]   ;;  %v1472_v18 = vld [vmem:[#allocation5 + $0x84] ss:$8 sps:$4 sm:$0xff]   ;;  %v1474_v19 = vld [vmem:[#allocation5 + $0x80] ss:$8 sps:$4 sm:$0xff]  }
  0x3d   :  { %410 = vmatprep.subr.bf16.mxu0 %v1454_v4  ;;  %1409 = vmatprep.subr.bf16.mxu1 %v1454_v4  ;;  %v1475_v20 = vld [vmem:[#allocation5 + $0x94] ss:$8 sps:$4 sm:$0xff]   ;;  %v1477_v21 = vld [vmem:[#allocation5 + $0x90] ss:$8 sps:$4 sm:$0xff]   ;;  %v1478_v22 = vld [vmem:[#allocation5 + $0xa4] ss:$8 sps:$4 sm:$0xff]  }
  0x3e   :  { %438 = vmatprep.mubr.bf16.mxu0 %v1498_v13  ;;  %508 = vmatprep.mubr.bf16.mxu1 %v1510_v17  ;;  %v1480_v23 = vld [vmem:[#allocation5 + $0xa0] ss:$8 sps:$4 sm:$0xff]   ;;  %v1481_v24 = vld [vmem:[#allocation5 + $0xb4] ss:$8 sps:$4 sm:$0xff]   ;;  %v1483_v25 = vld [vmem:[#allocation5 + $0xb0] ss:$8 sps:$4 sm:$0xff]  }
  0x3f   :  { %v1484_v26 = vld [vmem:[#allocation5 + $0xc4] ss:$8 sps:$4 sm:$0xff]   ;;  %v1486_v27 = vld [vmem:[#allocation5 + $0xc0] ss:$8 sps:$4 sm:$0xff]   ;;  %v1487_v28 = vld [vmem:[#allocation5 + $0xd4] ss:$8 sps:$4 sm:$0xff]  }
  0x40   :  { %411 = vmatpush1.bf16.msra.mxu0 %v1456_v5  ;;  %1425 = vmatpush1.bf16.msra.mxu1 %v1456_v5  ;;  %v1489_v29 = vld [vmem:[#allocation5 + $0xd0] ss:$8 sps:$4 sm:$0xff]   ;;  %v1490_v30 = vld [vmem:[#allocation5 + $0xe4] ss:$8 sps:$4 sm:$0xff]   ;;  %v1492_v31 = vld [vmem:[#allocation5 + $0xe0] ss:$8 sps:$4 sm:$0xff]  }
  0x41   :  { %412 = vmatprep.subr.bf16.mxu0 %v1457_v6  ;;  %1410 = vmatprep.subr.bf16.mxu1 %v1457_v6  ;;  %v1493_v32 = vld [vmem:[#allocation5 + $0xf4] ss:$8 sps:$4 sm:$0xff]   ;;  %v1495_v33 = vld [vmem:[#allocation5 + $0xf0] ss:$8 sps:$4 sm:$0xff]  }
  0x42   :  { %v1496_v34 = vld [vmem:[#allocation2] ss:$8 sps:$4 sm:$0xff]   ;;  %v1508_v35 = vld [vmem:[#allocation2 + $0x70] ss:$8 sps:$4 sm:$0xff]   ;;  %v1499_v36 = vld [vmem:[#allocation2 + $0x14] ss:$8 sps:$4 sm:$0xff]  }
  0x43   :  { %v1514_v37 = vld [vmem:[#allocation2 + $0x84] ss:$8 sps:$4 sm:$0xff]   ;;  %v1501_v38 = vld [vmem:[#allocation2 + $0x10] ss:$8 sps:$4 sm:$0xff]   ;;  %v1516_v39 = vld [vmem:[#allocation2 + $0x80] ss:$8 sps:$4 sm:$0xff]  }
  0x44   :  { %413 = vmatpush1.bf16.msra.mxu0 %v1459_v7  ;;  %1426 = vmatpush1.bf16.msra.mxu1 %v1459_v7  ;;  %v1502_v40 = vld [vmem:[#allocation2 + $0x24] ss:$8 sps:$4 sm:$0xff]   ;;  %v1520_v41 = vld [vmem:[#allocation2 + $0x94] ss:$8 sps:$4 sm:$0xff]   ;;  %v1504_v42 = vld [vmem:[#allocation2 + $0x20] ss:$8 sps:$4 sm:$0xff]  }
  0x45   :  { %414 = vmatprep.subr.bf16.mxu0 %v1460_v8  ;;  %1411 = vmatprep.subr.bf16.mxu1 %v1460_v8  ;;  %v1522_v43 = vld [vmem:[#allocation2 + $0x90] ss:$8 sps:$4 sm:$0xff]   ;;  %v1505_v44 = vld [vmem:[#allocation2 + $0x34] ss:$8 sps:$4 sm:$0xff]   ;;  %v1526_v45 = vld [vmem:[#allocation2 + $0xa4] ss:$8 sps:$4 sm:$0xff]  }
  0x46   :  { %v1507_v46 = vld [vmem:[#allocation2 + $0x30] ss:$8 sps:$4 sm:$0xff]   ;;  %v1528_v47 = vld [vmem:[#allocation2 + $0xa0] ss:$8 sps:$4 sm:$0xff]   ;;  %v1511_v48 = vld [vmem:[#allocation2 + $0x44] ss:$8 sps:$4 sm:$0xff]  }
  0x47   :  { %v1529_v49 = vld [vmem:[#allocation2 + $0xb4] ss:$8 sps:$4 sm:$0xff]   ;;  %v86_v50 = vld [vmem:[#allocation2 + $0xc0] sm:$0xff]  ;;  %v1531_v52 = vld [vmem:[#allocation2 + $0xb0] ss:$8 sps:$4 sm:$0xff]  }
  0x48   :  { %415 = vmatpush1.bf16.msra.mxu0 %v1462_v9  ;;  %1427 = vmatpush1.bf16.msra.mxu1 %v1462_v9  ;;  %v1513_v51 = vld [vmem:[#allocation2 + $0x40] ss:$8 sps:$4 sm:$0xff]   ;;  %v1517_v53 = vld [vmem:[#allocation2 + $0x54] ss:$8 sps:$4 sm:$0xff]   ;;  %v1374_v54 = vcombine.high %v86_v50, %v86_v50  ;;  %v1519_v55 = vld [vmem:[#allocation2 + $0x50] ss:$8 sps:$4 sm:$0xff]   ;;  %v1373_v56 = vcombine.low %v86_v50, %v86_v50 }
  0x49   :  { %416 = vmatprep.subr.bf16.mxu0 %v1463_v10  ;;  %1412 = vmatprep.subr.bf16.mxu1 %v1463_v10  ;;  %v1523_v57 = vld [vmem:[#allocation2 + $0x64] ss:$8 sps:$4 sm:$0xff]   ;;  %v1525_v58 = vld [vmem:[#allocation2 + $0x60] ss:$8 sps:$4 sm:$0xff]  }
  0x4c   :  { %417 = vmatpush1.bf16.msra.mxu0 %v1465_v11  ;;  %1428 = vmatpush1.bf16.msra.mxu1 %v1465_v11 }
  0x4d   :  { %418 = vmatprep.subr.bf16.mxu0 %v1466_v12  ;;  %1413 = vmatprep.subr.bf16.mxu1 %v1466_v12 }
  0x50   :  { %419 = vmatpush1.bf16.msra.mxu0 %v1468_v14  ;;  %1429 = vmatpush1.bf16.msra.mxu1 %v1468_v14 }
  0x51   :  { %420 = vmatprep.subr.bf16.mxu0 %v1469_v15  ;;  %1414 = vmatprep.subr.bf16.mxu1 %v1469_v15 }
  0x54   :  { %421 = vmatpush1.bf16.msra.mxu0 %v1471_v16  ;;  %1430 = vmatpush1.bf16.msra.mxu1 %v1471_v16 }
  0x55   :  { %422 = vmatprep.subr.bf16.mxu0 %v1472_v18  ;;  %1415 = vmatprep.subr.bf16.mxu1 %v1472_v18 }
  0x58   :  { %423 = vmatpush1.bf16.msra.mxu0 %v1474_v19  ;;  %1431 = vmatpush1.bf16.msra.mxu1 %v1474_v19 }
  0x59   :  { %424 = vmatprep.subr.bf16.mxu0 %v1475_v20  ;;  %1416 = vmatprep.subr.bf16.mxu1 %v1475_v20 }
  0x5c   :  { %425 = vmatpush1.bf16.msra.mxu0 %v1477_v21  ;;  %1432 = vmatpush1.bf16.msra.mxu1 %v1477_v21 }
  0x5d   :  { %426 = vmatprep.subr.bf16.mxu0 %v1478_v22  ;;  %1417 = vmatprep.subr.bf16.mxu1 %v1478_v22 }
  0x60   :  { %427 = vmatpush1.bf16.msra.mxu0 %v1480_v23  ;;  %1433 = vmatpush1.bf16.msra.mxu1 %v1480_v23 }
  0x61   :  { %428 = vmatprep.subr.bf16.mxu0 %v1481_v24  ;;  %1418 = vmatprep.subr.bf16.mxu1 %v1481_v24 }
  0x64   :  { %429 = vmatpush1.bf16.msra.mxu0 %v1483_v25  ;;  %1434 = vmatpush1.bf16.msra.mxu1 %v1483_v25 }
  0x65   :  { %430 = vmatprep.subr.bf16.mxu0 %v1484_v26  ;;  %1419 = vmatprep.subr.bf16.mxu1 %v1484_v26 }
  0x68   :  { %431 = vmatpush1.bf16.msra.mxu0 %v1486_v27  ;;  %1435 = vmatpush1.bf16.msra.mxu1 %v1486_v27 }
  0x69   :  { %432 = vmatprep.subr.bf16.mxu0 %v1487_v28  ;;  %1420 = vmatprep.subr.bf16.mxu1 %v1487_v28 }
  0x6c   :  { %433 = vmatpush1.bf16.msra.mxu0 %v1489_v29  ;;  %1436 = vmatpush1.bf16.msra.mxu1 %v1489_v29 }
  0x6d   :  { %434 = vmatprep.subr.bf16.mxu0 %v1490_v30  ;;  %1421 = vmatprep.subr.bf16.mxu1 %v1490_v30 }
  0x70   :  { %435 = vmatpush1.bf16.msra.mxu0 %v1492_v31  ;;  %1437 = vmatpush1.bf16.msra.mxu1 %v1492_v31 }
  0x71   :  { %436 = vmatprep.subr.bf16.mxu0 %v1493_v32  ;;  %1422 = vmatprep.subr.bf16.mxu1 %v1493_v32 }
  0x74   :  { %437 = vmatpush1.bf16.msra.mxu0 %v1495_v33  ;;  %1438 = vmatpush1.bf16.msra.mxu1 %v1495_v33 }
  0x77   :  { %439 = vmatmul.mubr.bf16.vlgmr.msra.gmra.mrb[0].mxu0 %v1496_v34  ;;  %509 = vmatmul.mubr.bf16.vlgmr.msra.gmra.mrb[0].mxu1 %v1508_v35 }
  0x78   :  { %448 = vmatprep.mubr.bf16.mxu0 %v1499_v36  ;;  %518 = vmatprep.mubr.bf16.mxu1 %v1514_v37 }
  0x7f   :  { %449 = vmatmul.mubr.bf16.gmra.mrb[4].mxu0 %v1501_v38  ;;  %519 = vmatmul.mubr.bf16.gmra.mrb[4].mxu1 %v1516_v39 }
  0x80   :  { %458 = vmatprep.mubr.bf16.mxu0 %v1502_v40  ;;  %528 = vmatprep.mubr.bf16.mxu1 %v1520_v41 }
  0x87   :  { %459 = vmatmul.mubr.bf16.gmra.mrb[8].mxu0 %v1504_v42  ;;  %529 = vmatmul.mubr.bf16.gmra.mrb[8].mxu1 %v1522_v43 }
  0x88   :  { %468 = vmatprep.mubr.bf16.mxu0 %v1505_v44  ;;  %538 = vmatprep.mubr.bf16.mxu1 %v1526_v45 }
  0x8f   :  { %469 = vmatmul.mubr.bf16.gmra.mrb[12].mxu0 %v1507_v46  ;;  %539 = vmatmul.mubr.bf16.gmra.mrb[12].mxu1 %v1528_v47 }
  0x90   :  { %478 = vmatprep.mubr.bf16.mxu0 %v1511_v48  ;;  %548 = vmatprep.mubr.bf16.mxu1 %v1529_v49 }
  0x97   :  { %479 = vmatmul.mubr.bf16.gmra.mrb[16].mxu0 %v1513_v51  ;;  %549 = vmatmul.mubr.bf16.gmra.mrb[16].mxu1 %v1531_v52 }
  0x98   :  { %488 = vmatprep.mubr.bf16.mxu0 %v1517_v53  ;;  %558 = vmatprep.mubr.bf16.mxu1 %v1374_v54 }
  0x9f   :  { %489 = vmatmul.mubr.bf16.gmra.mrb[20].mxu0 %v1519_v55  ;;  %559 = vmatmul.mubr.bf16.gmra.mrb[20].mxu1 %v1373_v56 }
  0xa0   :  { %498 = vmatprep.mubr.bf16.mxu0 %v1523_v57 }
  0xa7   :  { %499 = vmatmul.mubr.bf16.gmra.mrb[24].mxu0 %v1525_v58 }
 0x14a   :  { %v1723_v59 = vpop.f32.mrb[0].mxu0  ;;  %v1725_v60 = vpop.f32.mrb[0].mxu1 }
 0x14b   :  { %v1727_v61 = vpop.f32.mrb[1].mxu0  ;;  %v1729_v62 = vpop.f32.mrb[1].mxu1  ;;  %v627_v1 = vmul.f32 %v1723_v59, %v1723_v59 }
 0x14c   :  { %v1731_v63 = vpop.f32.mrb[2].mxu0  ;;  %v1733_v0 = vpop.f32.mrb[2].mxu1  ;;  %v628_v6 = vmul.f32 %v1727_v61, %v1727_v61 }
 0x14d   :  { %v567_v2 = vadd.f32 %v1731_v63, %v1723_v59  ;;  %v629_v3 = vmul.f32 %v1731_v63, %v1731_v63  ;;  %v1741_v4 = vpop.f32.mrb[3].mxu0  ;;  %v1743_v5 = vpop.f32.mrb[3].mxu1 }
 0x14e   :  { %v597_v7 = vadd.f32 %v1741_v4, %v1727_v61  ;;  %v630_v8 = vmul.f32 %v1741_v4, %v1741_v4 }
 0x14f   :  { %v677_v9 = vadd.f32 %v629_v3, %v627_v1 }
 0x150   :  { %v707_v10 = vadd.f32 %v630_v8, %v628_v6 }
 0x152   :  { %v1751_v11 = vpop.f32.mrb[4].mxu0  ;;  %v1753_v12 = vpop.f32.mrb[4].mxu1 }
 0x153   :  { %v568_v13 = vadd.f32 %v567_v2, %v1751_v11  ;;  %v631_v14 = vmul.f32 %v1751_v11, %v1751_v11  ;;  %v1758_v15 = vpop.f32.mrb[5].mxu0  ;;  %v1760_v16 = vpop.f32.mrb[5].mxu1 }
 0x154   :  { %2983 = vst [vmem:[#allocation12_spill] sm:$0xff] %v1760_v16  ;;  %v598_v17 = vadd.f32 %v597_v7, %v1758_v15  ;;  %v632_v18 = vmul.f32 %v1758_v15, %v1758_v15  ;;  %v1765_v19 = vpop.f32.mrb[6].mxu0  ;;  %v1767_v20 = vpop.f32.mrb[6].mxu1 }
 0x155   :  { %v678_v21 = vadd.f32 %v677_v9, %v631_v14  ;;  %v569_v22 = vadd.f32 %v568_v13, %v1765_v19  ;;  %v633_v23 = vmul.f32 %v1765_v19, %v1765_v19  ;;  %v1772_v24 = vpop.f32.mrb[7].mxu0  ;;  %v1774_v25 = vpop.f32.mrb[7].mxu1 }
 0x156   :  { %2984 = vst [vmem:[#allocation13_spill] sm:$0xff] %v1774_v25  ;;  %v708_v26 = vadd.f32 %v707_v10, %v632_v18  ;;  %v599_v27 = vadd.f32 %v598_v17, %v1772_v24  ;;  %v634_v28 = vmul.f32 %v1772_v24, %v1772_v24 }
 0x157   :  { %v679_v29 = vadd.f32 %v678_v21, %v633_v23 }
 0x158   :  { %v709_v30 = vadd.f32 %v708_v26, %v634_v28 }
 0x15a   :  { %v1779_v31 = vpop.f32.mrb[8].mxu0  ;;  %v1781_v32 = vpop.f32.mrb[8].mxu1 }
 0x15b   :  { %v570_v33 = vadd.f32 %v569_v22, %v1779_v31  ;;  %v635_v34 = vmul.f32 %v1779_v31, %v1779_v31  ;;  %v1786_v35 = vpop.f32.mrb[9].mxu0  ;;  %v1788_v36 = vpop.f32.mrb[9].mxu1 }
 0x15c   :  { %2985 = vst [vmem:[#allocation14_spill] sm:$0xff] %v1788_v36  ;;  %v600_v37 = vadd.f32 %v599_v27, %v1786_v35  ;;  %v636_v38 = vmul.f32 %v1786_v35, %v1786_v35  ;;  %v1793_v39 = vpop.f32.mrb[10].mxu0  ;;  %v1795_v40 = vpop.f32.mrb[10].mxu1 }
 0x15d   :  { %v680_v41 = vadd.f32 %v679_v29, %v635_v34  ;;  %v571_v42 = vadd.f32 %v570_v33, %v1793_v39  ;;  %v637_v43 = vmul.f32 %v1793_v39, %v1793_v39  ;;  %v1800_v44 = vpop.f32.mrb[11].mxu0  ;;  %v1802_v45 = vpop.f32.mrb[11].mxu1 }
 0x15e   :  { %2986 = vst [vmem:[#allocation15_spill] sm:$0xff] %v1802_v45  ;;  %v710_v46 = vadd.f32 %v709_v30, %v636_v38  ;;  %v601_v47 = vadd.f32 %v600_v37, %v1800_v44  ;;  %v638_v48 = vmul.f32 %v1800_v44, %v1800_v44 }
 0x15f   :  { %v681_v49 = vadd.f32 %v680_v41, %v637_v43 }
 0x160   :  { %v711_v50 = vadd.f32 %v710_v46, %v638_v48 }
 0x162   :  { %v1807_v51 = vpop.f32.mrb[12].mxu0  ;;  %v1809_v52 = vpop.f32.mrb[12].mxu1 }
 0x163   :  { %v572_v53 = vadd.f32 %v571_v42, %v1807_v51  ;;  %v639_v54 = vmul.f32 %v1807_v51, %v1807_v51  ;;  %v1814_v55 = vpop.f32.mrb[13].mxu0  ;;  %v1816_v56 = vpop.f32.mrb[13].mxu1 }
 0x164   :  { %2987 = vst [vmem:[#allocation16_spill] sm:$0xff] %v1816_v56  ;;  %v602_v57 = vadd.f32 %v601_v47, %v1814_v55  ;;  %v640_v58 = vmul.f32 %v1814_v55, %v1814_v55  ;;  %v1821_v1 = vpop.f32.mrb[14].mxu0  ;;  %v1823_v2 = vpop.f32.mrb[14].mxu1 }
 0x165   :  { %v682_v3 = vadd.f32 %v681_v49, %v639_v54  ;;  %v573_v6 = vadd.f32 %v572_v53, %v1821_v1  ;;  %v641_v7 = vmul.f32 %v1821_v1, %v1821_v1  ;;  %v1828_v8 = vpop.f32.mrb[15].mxu0  ;;  %v1830_v9 = vpop.f32.mrb[15].mxu1 }
 0x166   :  { %2988 = vst [vmem:[#allocation17_spill] sm:$0xff] %v1830_v9  ;;  %v712_v10 = vadd.f32 %v711_v50, %v640_v58  ;;  %v603_v13 = vadd.f32 %v602_v57, %v1828_v8  ;;  %v642_v14 = vmul.f32 %v1828_v8, %v1828_v8 }
 0x167   :  { %v683_v17 = vadd.f32 %v682_v3, %v641_v7 }
 0x168   :  { %v713_v18 = vadd.f32 %v712_v10, %v642_v14 }
 0x16a   :  { %v1835_v21 = vpop.f32.mrb[16].mxu0  ;;  %v1837_v22 = vpop.f32.mrb[16].mxu1 }
 0x16b   :  { %v574_v23 = vadd.f32 %v573_v6, %v1835_v21  ;;  %v643_v26 = vmul.f32 %v1835_v21, %v1835_v21  ;;  %v1842_v27 = vpop.f32.mrb[17].mxu0  ;;  %v1844_v28 = vpop.f32.mrb[17].mxu1 }
 0x16c   :  { %2989 = vst [vmem:[#allocation18_spill] sm:$0xff] %v1844_v28  ;;  %v604_v29 = vadd.f32 %v603_v13, %v1842_v27  ;;  %v644_v30 = vmul.f32 %v1842_v27, %v1842_v27  ;;  %v1849_v33 = vpop.f32.mrb[18].mxu0  ;;  %v1851_v34 = vpop.f32.mrb[18].mxu1 }
 0x16d   :  { %v684_v37 = vadd.f32 %v683_v17, %v643_v26  ;;  %v575_v38 = vadd.f32 %v574_v23, %v1849_v33  ;;  %v645_v41 = vmul.f32 %v1849_v33, %v1849_v33  ;;  %v1856_v42 = vpop.f32.mrb[19].mxu0  ;;  %v1858_v43 = vpop.f32.mrb[19].mxu1 }
 0x16e   :  { %2990 = vst [vmem:[#allocation19_spill] sm:$0xff] %v1858_v43  ;;  %v714_v46 = vadd.f32 %v713_v18, %v644_v30  ;;  %v605_v47 = vadd.f32 %v604_v29, %v1856_v42  ;;  %v646_v48 = vmul.f32 %v1856_v42, %v1856_v42 }
 0x16f   :  { %v685_v49 = vadd.f32 %v684_v37, %v645_v41 }
 0x170   :  { %v715_v50 = vadd.f32 %v714_v46, %v646_v48 }
 0x172   :  { %v1863_v53 = vpop.f32.mrb[20].mxu0  ;;  %v1865_v54 = vpop.f32.mrb[20].mxu1 }
 0x173   :  { %v576_v57 = vadd.f32 %v575_v38, %v1863_v53  ;;  %v647_v58 = vmul.f32 %v1863_v53, %v1863_v53  ;;  %v1870_v3 = vpop.f32.mrb[21].mxu0  ;;  %v1872_v6 = vpop.f32.mrb[21].mxu1 }
 0x174   :  { %2991 = vst [vmem:[#allocation20_spill] sm:$0xff] %v1870_v3  ;;  %2992 = vst [vmem:[#allocation21_spill] sm:$0xff] %v1872_v6  ;;  %v606_v7 = vadd.f32 %v605_v47, %v1870_v3  ;;  %v648_v10 = vmul.f32 %v1870_v3, %v1870_v3  ;;  %v1877_v13 = vpop.f32.mrb[22].mxu0  ;;  %v564_v14 = vpop.f32.mrb[22].mxu1 }
 0x175   :  { %v686_v17 = vadd.f32 %v685_v49, %v647_v58  ;;  %v577_v18 = vadd.f32 %v576_v57, %v1877_v13  ;;  %v649_v23 = vmul.f32 %v1877_v13, %v1877_v13  ;;  %v1882_v26 = vpop.f32.mrb[23].mxu0  ;;  %v565_v29 = vpop.f32.mrb[23].mxu1 }
 0x176   :  { %2993 = vst [vmem:[#allocation22_spill] sm:$0xff] %v1882_v26  ;;  %v716_v30 = vadd.f32 %v715_v50, %v648_v10  ;;  %v607_v37 = vadd.f32 %v606_v7, %v1882_v26  ;;  %v650_v38 = vmul.f32 %v1882_v26, %v1882_v26 }
 0x177   :  { %v687_v41 = vadd.f32 %v686_v17, %v649_v23 }
 0x178   :  { %v717_v46 = vadd.f32 %v716_v30, %v650_v38 }
 0x17a   :  { %v1887_v47 = vpop.f32.mrb[24].mxu0 }
 0x17b   :  { %v578_v48 = vadd.f32 %v577_v18, %v1887_v47  ;;  %v651_v49 = vmul.f32 %v1887_v47, %v1887_v47  ;;  %v1892_v57 = vpop.f32.mrb[25].mxu0 }
 0x17c   :  { %2994 = vst [vmem:[#allocation23_spill] sm:$0xff] %v1892_v57  ;;  %v608_v58 = vadd.f32 %v607_v37, %v1892_v57  ;;  %v652_v50 = vmul.f32 %v1892_v57, %v1892_v57  ;;  %v1897_v7 = vpop.f32.mrb[26].mxu0  ;;  %v655_v37 = vmul.f32 %v1725_v60, %v1725_v60 }
 0x17d   :  { %v688_v10 = vadd.f32 %v687_v41, %v651_v49  ;;  %v579_v14 = vadd.f32 %v578_v48, %v1897_v7  ;;  %v653_v17 = vmul.f32 %v1897_v7, %v1897_v7  ;;  %v1902_v23 = vpop.f32.mrb[27].mxu0  ;;  %v656_v41 = vmul.f32 %v1729_v62, %v1729_v62 }
 0x17e   :  { %2995 = vst [vmem:[#allocation24_spill] sm:$0xff] %v1902_v23  ;;  %v718_v18 = vadd.f32 %v717_v46, %v652_v50  ;;  %v609_v29 = vadd.f32 %v608_v58, %v1902_v23  ;;  %v654_v30 = vmul.f32 %v1902_v23, %v1902_v23  ;;  %v657_v46 = vmul.f32 %v1733_v0, %v1733_v0 }
 0x17f   :  { %v580_v38 = vadd.f32 %v579_v14, %v1725_v60  ;;  %v689_v57 = vadd.f32 %v688_v10, %v653_v17  ;;  %v658_v23 = vmul.f32 %v1743_v5, %v1743_v5  ;;  %v659_v10 = vmul.f32 %v1753_v12, %v1753_v12 }
 0x180   :  { %v610_v48 = vadd.f32 %v609_v29, %v1729_v62  ;;  %v719_v49 = vadd.f32 %v718_v18, %v654_v30  ;;  %v660_v18 = vmul.f32 %v1760_v16, %v1760_v16 }
 0x181   :  { %v581_v58 = vadd.f32 %v580_v38, %v1733_v0  ;;  %v690_v50 = vadd.f32 %v689_v57, %v655_v37  ;;  %v661_v57 = vmul.f32 %v1767_v20, %v1767_v20 }
 0x182   :  { %v611_v26 = vadd.f32 %v610_v48, %v1743_v5  ;;  %v720_v3 = vadd.f32 %v719_v49, %v656_v41  ;;  %v662_v41 = vmul.f32 %v1774_v25, %v1774_v25 }
 0x183   :  { %v582_v14 = vadd.f32 %v581_v58, %v1753_v12  ;;  %v691_v17 = vadd.f32 %v690_v50, %v657_v46  ;;  %v663_v46 = vmul.f32 %v1781_v32, %v1781_v32 }
 0x184   :  { %v612_v29 = vadd.f32 %v611_v26, %v1760_v16  ;;  %v721_v30 = vadd.f32 %v720_v3, %v658_v23  ;;  %v664_v3 = vmul.f32 %v1788_v36, %v1788_v36 }
 0x185   :  { %v692_v37 = vadd.f32 %v691_v17, %v659_v10  ;;  %v583_v38 = vadd.f32 %v582_v14, %v1767_v20  ;;  %v665_v10 = vmul.f32 %v1795_v40, %v1795_v40 }
 0x186   :  { %v722_v48 = vadd.f32 %v721_v30, %v660_v18  ;;  %v613_v49 = vadd.f32 %v612_v29, %v1774_v25  ;;  %v666_v18 = vmul.f32 %v1802_v45, %v1802_v45 }
 0x187   :  { %v584_v58 = vadd.f32 %v583_v38, %v1781_v32  ;;  %v693_v50 = vadd.f32 %v692_v37, %v661_v57  ;;  %v667_v37 = vmul.f32 %v1809_v52, %v1809_v52 }
 0x188   :  { %v614_v26 = vadd.f32 %v613_v49, %v1788_v36  ;;  %v723_v23 = vadd.f32 %v722_v48, %v662_v41  ;;  %v668_v48 = vmul.f32 %v1816_v56, %v1816_v56 }
 0x189   :  { %v585_v14 = vadd.f32 %v584_v58, %v1795_v40  ;;  %v694_v17 = vadd.f32 %v693_v50, %v663_v46  ;;  %v669_v50 = vmul.f32 %v1823_v2, %v1823_v2 }
 0x18a   :  { %v615_v29 = vadd.f32 %v614_v26, %v1802_v45  ;;  %v724_v30 = vadd.f32 %v723_v23, %v664_v3  ;;  %v670_v23 = vmul.f32 %v1830_v9, %v1830_v9 }
 0x18b   :  { %v586_v57 = vadd.f32 %v585_v14, %v1809_v52  ;;  %v695_v38 = vadd.f32 %v694_v17, %v665_v10  ;;  %v671_v17 = vmul.f32 %v1837_v22, %v1837_v22 }
 0x18c   :  { %v616_v41 = vadd.f32 %v615_v29, %v1816_v56  ;;  %v725_v49 = vadd.f32 %v724_v30, %v666_v18  ;;  %v672_v30 = vmul.f32 %v1844_v28, %v1844_v28 }
 0x18d   :  { %v696_v58 = vadd.f32 %v695_v38, %v667_v37  ;;  %v587_v46 = vadd.f32 %v586_v57, %v1823_v2  ;;  %v673_v38 = vmul.f32 %v1851_v34, %v1851_v34 }
 0x18e   :  { %v726_v26 = vadd.f32 %v725_v49, %v668_v48  ;;  %v617_v3 = vadd.f32 %v616_v41, %v1830_v9  ;;  %v675_v41 = vmul.f32 %v1865_v54, %v1865_v54 }
 0x18f   :  { %v697_v14 = vadd.f32 %v696_v58, %v669_v50  ;;  %v588_v10 = vadd.f32 %v587_v46, %v1837_v22  ;;  %v674_v58 = vmul.f32 %v1858_v43, %v1858_v43  ;;  %v676_v46 = vmul.f32 %v1872_v6, %v1872_v6 }
 0x190   :  { %v727_v29 = vadd.f32 %v726_v26, %v670_v23  ;;  %v618_v18 = vadd.f32 %v617_v3, %v1844_v28 }
 0x191   :  { %v698_v57 = vadd.f32 %v697_v14, %v671_v17  ;;  %v589_v37 = vadd.f32 %v588_v10, %v1851_v34 }
 0x192   :  { %v728_v48 = vadd.f32 %v727_v29, %v672_v30  ;;  %v619_v49 = vadd.f32 %v618_v18, %v1858_v43 }
 0x193   :  { %v699_v50 = vadd.f32 %v698_v57, %v673_v38  ;;  %v590_v26 = vadd.f32 %v589_v37, %v1865_v54 }
 0x194   :  { %v729_v3 = vadd.f32 %v728_v48, %v674_v58  ;;  %v620_v23 = vadd.f32 %v619_v49, %v1872_v6 }
 0x195   :  { %v591_v14 = vrot.slane %v590_v26, 4  ;;  %v700_v10 = vadd.f32 %v699_v50, %v675_v41 }
 0x196   :  { %v621_v17 = vrot.slane %v620_v23, 4  ;;  %v730_v28 = vadd.f32 %v729_v3, %v676_v46 }
 0x197   :  { %v592_v9 = vadd.f32 %v591_v14, %v590_v26  ;;  %v701_v29 = vrot.slane %v700_v10, 4 }
 0x198   :  { %v622_v30 = vadd.f32 %v621_v17, %v620_v23  ;;  %v731_v18 = vrot.slane %v730_v28, 4 }
 0x199   :  { %v593_v56 = vrot.slane %v592_v9, 2  ;;  %v702_v45 = vadd.f32 %v701_v29, %v700_v10 }
 0x19a   :  { %v623_v43 = vrot.slane %v622_v30, 2  ;;  %v732_v36 = vadd.f32 %v731_v18, %v730_v28 }
 0x19b   :  { %v594_v25 = vadd.f32 %v593_v56, %v592_v9  ;;  %v703_v16 = vrot.slane %v702_v45, 2  ;;  %v753_v9 = vlaneseq }
 0x19c   :  { %v624_v57 = vadd.f32 %v623_v43, %v622_v30  ;;  %v733_v38 = vrot.slane %v732_v36, 2 }
 0x19d   :  { %v595_v37 = vrot.slane %v594_v25, 1  ;;  %v704_v48 = vadd.f32 %v703_v16, %v702_v45  ;;  %v1973_v45 = vshrl.u32 %v753_v9, 7 }
 0x19e   :  { %v625_v58 = vrot.slane %v624_v57, 1  ;;  %v734_v49 = vadd.f32 %v733_v38, %v732_v36  ;;  %v1637_v36 = vmov 1966171168   ;;  %v751_v38 = vld [vmem:[%s2865_s2] sm:$0x3] }
 0x19f   :  { %v596_v6 = vadd.f32 %v595_v37, %v594_v25  ;;  %v705_v41 = vrot.slane %v704_v48, 1  ;;  %v2882_v37 = vsub.s32 1, %v1973_v45 }
 0x1a0   :  { %v626_v50 = vadd.f32 %v625_v58, %v624_v57  ;;  %v735_v46 = vrot.slane %v734_v49, 1  ;;  %v830_v57 = vunpack.c.l.s4 %v1637_v36  ;;  %v1982_v58 = vld [vmem:[#allocation7] sm:$0xff] }
 0x1a1   :  { %v706_v26 = vadd.f32 %v705_v41, %v704_v48  ;;  %v737_v3 = vmul.f32 0.005, %v596_v6  ;;  %v1976_v6 = vsub.s32 0, %v1973_v45  ;;  %2996 = vst [vmem:[#allocation25_spill] sm:$0xff] %v1982_v58 }
 0x1a2   :  { %v736_v23 = vadd.f32 %v735_v46, %v734_v49  ;;  %v738_v14 = vmul.f32 0.005, %v626_v50  ;;  %v831_v48 = vunpack.c.0.s8 %v830_v57  ;;  %v1984_v49 = vld [vmem:[#allocation7 + $0x8] sm:$0xff]  ;;  %v1987_v50 = vld [vmem:[#allocation7 + $0x10] sm:$0xff]  ;;  %v1989_v46 = vld [vmem:[#allocation7 + $0x18] sm:$0xff] }
 0x1a3   :  { %v739_v17 = vmul.f32 0.005, %v706_v26  ;;  %v741_v10 = vmul.f32 %v737_v3, %v737_v3  ;;  %2997 = vst [vmem:[#allocation26_spill] sm:$0xff] %v1984_v49  ;;  %v756_v41 = vrot.slane %v751_v38, %v1976_v6  ;;  %2998 = vst [vmem:[#allocation27_spill] sm:$0xff] %v1987_v50  ;;  %v760_v26 = vrot.slane %v751_v38, %v2882_v37  ;;  %v3028_v49 = vld [vmem:[#allocation19_spill] sm:$0xff] }
 0x1a4   :  { %v740_v29 = vmul.f32 0.005, %v736_v23  ;;  %v742_v28 = vmul.f32 %v738_v14, %v738_v14  ;;  %2999 = vst [vmem:[#allocation28_spill] sm:$0xff] %v1989_v46  ;;  %v1993_v23 = vld [vmem:[#allocation7 + $0x20] sm:$0xff] }
 0x1a5   :  { %v743_v56 = vsub.f32 %v739_v17, %v741_v10  ;;  %3000 = vst [vmem:[#allocation29_spill] sm:$0xff] %v1993_v23  ;;  %v1996_v17 = vsub.s32 %v831_v48, %v1973_v45  ;;  %v1998_v10 = vld [vmem:[#allocation7 + $0x28] sm:$0xff]  ;;  %v2011_v48 = vld [vmem:[#allocation7 + $0x40] sm:$0xff] }
 0x1a6   :  { %v744_v43 = vsub.f32 %v740_v29, %v742_v28  ;;  %3001 = vst [vmem:[#allocation30_spill] sm:$0xff] %v1998_v10  ;;  %v2000_v29 = vld [vmem:[#allocation7 + $0x30] sm:$0xff]  ;;  %3004 = vst [vmem:[#allocation33_spill] sm:$0xff] %v2011_v48  ;;  %v2222_v48 = vld [vmem:[#allocation7 + $0xa8] sm:$0xff] }
 0x1a7   :  { %v745_v30 = vmax.f32 %v743_v56, 0.0  ;;  %3002 = vst [vmem:[#allocation31_spill] sm:$0xff] %v2000_v29  ;;  %v2163_v29 = vld [vmem:[#allocation7 + $0x50] sm:$0xff]  ;;  %3040 = vst [vmem:[#allocation43_spill] sm:$0xff] %v2222_v48 }
 0x1a8   :  { %v746_v18 = vmax.f32 %v744_v43, 0.0 }
 0x1a9   :  { %v747_v16 = vadd.f32 1e-05, %v745_v30  ;;  %v2005_v30 = vld [vmem:[#allocation7 + $0x38] sm:$0xff] }
 0x1aa   :  { %v748_v25 = vadd.f32 1e-05, %v746_v18  ;;  %3003 = vst [vmem:[#allocation32_spill] sm:$0xff] %v2005_v30 }
 0x1ab   :  { %1534 = vrsqrt.f32 %v747_v16 }
 0x1ac   :  { %1536 = vrsqrt.f32 %v748_v25 }
 0x1b5   :  { %v1535_v43 = vpop.eup %1534 }
 0x1b6   :  { %v1537_v57 = vpop.eup %1536  ;;  %v763_v38 = vmul.f32 %v1535_v43, %v756_v41 }
 0x1b7   :  { %v764_v37 = vmul.f32 %v1537_v57, %v760_v26 }
 0x1b8   :  { %v768_v25 = vrot.slane %v763_v38, %v1976_v6  ;;  %v2020_v36 = vmul.f32 %v763_v38, %v737_v3 }
 0x1b9   :  { %v772_v28 = vrot.slane %v764_v37, %v1976_v6  ;;  %v2025_v56 = vmul.f32 %v764_v37, %v738_v14 }
 0x1ba   :  { %v2030_v18 = vmul.f32 %v768_v25, %v1723_v59  ;;  %v2033_v16 = vmul.f32 %v768_v25, %v1731_v63  ;;  %v2036_v3 = vmul.f32 %v768_v25, %v1751_v11  ;;  %v2039_v38 = vmul.f32 %v768_v25, %v1765_v19 }
 0x1bb   :  { %v2042_v43 = vmul.f32 %v768_v25, %v1779_v31  ;;  %v2045_v14 = vmul.f32 %v768_v25, %v1793_v39  ;;  %v2048_v37 = vmul.f32 %v768_v25, %v1807_v51  ;;  %v2051_v59 = vmul.f32 %v768_v25, %v1821_v1 }
 0x1bc   :  { %v2054_v63 = vmul.f32 %v768_v25, %v1835_v21  ;;  %v2057_v11 = vmul.f32 %v768_v25, %v1849_v33  ;;  %v2060_v19 = vmul.f32 %v768_v25, %v1863_v53  ;;  %v2063_v31 = vmul.f32 %v768_v25, %v1877_v13 }
 0x1bd   :  { %v2066_v39 = vmul.f32 %v768_v25, %v1887_v47  ;;  %v2069_v51 = vmul.f32 %v768_v25, %v1897_v7  ;;  %v2072_v1 = vmul.f32 %v768_v25, %v1725_v60  ;;  %v2075_v21 = vmul.f32 %v768_v25, %v1733_v0 }
 0x1be   :  { %v2078_v33 = vmul.f32 %v768_v25, %v1753_v12  ;;  %v2081_v53 = vmul.f32 %v768_v25, %v1767_v20  ;;  %v2084_v13 = vmul.f32 %v768_v25, %v1781_v32  ;;  %v2087_v47 = vmul.f32 %v768_v25, %v1795_v40 }
 0x1bf   :  { %v2090_v7 = vmul.f32 %v768_v25, %v1809_v52  ;;  %v2093_v60 = vmul.f32 %v768_v25, %v1823_v2  ;;  %v2096_v0 = vmul.f32 %v768_v25, %v1837_v22  ;;  %v2099_v12 = vmul.f32 %v768_v25, %v1851_v34 }
 0x1c0   :  { %v2102_v20 = vmul.f32 %v768_v25, %v1865_v54  ;;  %v2105_v32 = vmul.f32 %v772_v28, %v1727_v61  ;;  %v2108_v40 = vmul.f32 %v772_v28, %v1741_v4  ;;  %v2111_v52 = vmul.f32 %v772_v28, %v1758_v15 }
 0x1c1   :  { %3005 = vst [vmem:[#allocation34_spill] sm:$0xff] %v2090_v7  ;;  %3006 = vst [vmem:[#allocation35_spill] sm:$0xff] %v2093_v60  ;;  %v2114_v2 = vmul.f32 %v772_v28, %v1772_v24  ;;  %v2117_v22 = vmul.f32 %v772_v28, %v1786_v35  ;;  %v2120_v34 = vmul.f32 %v772_v28, %v1800_v44  ;;  %v3010_v24 = vld [vmem:[#allocation20_spill] sm:$0xff]  ;;  %v3011_v35 = vld [vmem:[#allocation22_spill] sm:$0xff] }
 0x1c2   :  { %3007 = vst [vmem:[#allocation36_spill] sm:$0xff] %v2096_v0  ;;  %3008 = vst [vmem:[#allocation37_spill] sm:$0xff] %v2099_v12  ;;  %v2123_v54 = vmul.f32 %v772_v28, %v1814_v55  ;;  %v2126_v61 = vmul.f32 %v772_v28, %v1828_v8  ;;  %v2129_v4 = vmul.f32 %v772_v28, %v1842_v27  ;;  %v3012_v44 = vld [vmem:[#allocation23_spill] sm:$0xff]  ;;  %v3013_v55 = vld [vmem:[#allocation24_spill] sm:$0xff] }
 0x1c3   :  { %3009 = vst [vmem:[#allocation38_spill] sm:$0xff] %v2102_v20  ;;  %v2132_v15 = vmul.f32 %v772_v28, %v1856_v42  ;;  %v2135_v25 = vmul.f32 %v772_v28, %v3010_v24  ;;  %v2138_v57 = vmul.f32 %v772_v28, %v3011_v35  ;;  %v2141_v26 = vmul.f32 %v772_v28, %v3012_v44  ;;  %v3014_v42 = vld [vmem:[#allocation12_spill] sm:$0xff]  ;;  %v3015_v24 = vld [vmem:[#allocation13_spill] sm:$0xff]  ;;  %v3016_v35 = vld [vmem:[#allocation14_spill] sm:$0xff] }
 0x1c4   :  { %v2144_v41 = vmul.f32 %v772_v28, %v3013_v55  ;;  %v2147_v8 = vmul.f32 %v772_v28, %v1729_v62  ;;  %v2150_v27 = vmul.f32 %v772_v28, %v1743_v5  ;;  %v2153_v58 = vmul.f32 %v772_v28, %v3014_v42  ;;  %v2161_v44 = vld [vmem:[#allocation7 + $0x48] sm:$0xff]  ;;  %3018 = vst [vmem:[#allocation22_spill] sm:$0xff] %v2163_v29  ;;  %v3019_v55 = vld [vmem:[#allocation15_spill] sm:$0xff]  ;;  %v3020_v62 = vld [vmem:[#allocation16_spill] sm:$0xff] }
 0x1c5   :  { %v2156_v9 = vmul.f32 %v772_v28, %v3015_v24  ;;  %v2159_v30 = vmul.f32 %v772_v28, %v3016_v35  ;;  %3017 = vst [vmem:[#allocation20_spill] sm:$0xff] %v2161_v44  ;;  %v2166_v10 = vmul.f32 %v772_v28, %v3019_v55  ;;  %v2169_v23 = vmul.f32 %v772_v28, %v3020_v62  ;;  %v3022_v5 = vld [vmem:[#allocation17_spill] sm:$0xff]  ;;  %v3024_v42 = vld [vmem:[#allocation18_spill] sm:$0xff]  ;;  %v2177_v24 = vld [vmem:[#allocation7 + $0x58] sm:$0xff] }
 0x1c6   :  { %v2172_v46 = vmul.f32 %v772_v28, %v3022_v5  ;;  %v2175_v50 = vmul.f32 %v772_v28, %v3024_v42  ;;  %3026 = vst [vmem:[#allocation13_spill] sm:$0xff] %v2177_v24  ;;  %v2179_v35 = vld [vmem:[#allocation7 + $0x60] sm:$0xff]  ;;  %v2182_v20 = vmul.f32 %v772_v28, %v3028_v49  ;;  %v828_v55 = vcombine.low %v2020_v36, %v2025_v56  ;;  %v2189_v62 = vld [vmem:[#allocation7 + $0x68] sm:$0xff]  ;;  %v2191_v5 = vld [vmem:[#allocation7 + $0x70] sm:$0xff] }
 0x1c7   :  { %3021 = vst [vmem:[#allocation23_spill] sm:$0xff] %v2169_v23  ;;  %3027 = vst [vmem:[#allocation14_spill] sm:$0xff] %v2179_v35  ;;  %v3030_v12 = vld [vmem:[#allocation21_spill] sm:$0xff]  ;;  %v2203_v56 = vld [vmem:[#allocation7 + $0x88] sm:$0xff] }
 0x1c8   :  { %3023 = vst [vmem:[#allocation24_spill] sm:$0xff] %v2172_v46  ;;  %3025 = vst [vmem:[#allocation12_spill] sm:$0xff] %v2175_v50  ;;  %v2185_v0 = vmul.f32 %v772_v28, %v3030_v12  ;;  %v2194_v50 = vld [vmem:[#allocation7 + $0x78] sm:$0xff]  ;;  %v835_v12 = vrot.slane %v828_v55, %v1996_v17  ;;  %v2211_v46 = vld [vmem:[#allocation7 + $0x90] sm:$0xff] }
 0x1c9   :  { %3029 = vst [vmem:[#allocation15_spill] sm:$0xff] %v2182_v20  ;;  %3032 = vst [vmem:[#allocation17_spill] sm:$0xff] %v2189_v62  ;;  %v823_v60 = vld [vmem:[%s2866_s3] sm:$0x3]  ;;  %v2220_v24 = vld [vmem:[#allocation7 + $0xa0] sm:$0xff]  ;;  %s1638_s3 = smov [#allocation8]  }
 0x1ca   :  { %3031 = vst [vmem:[#allocation16_spill] sm:$0xff] %v2185_v0  ;;  %3033 = vst [vmem:[#allocation18_spill] sm:$0xff] %v2191_v5  ;;  %v2201_v0 = vld [vmem:[#allocation7 + $0x80] sm:$0xff]  ;;  %v2213_v49 = vld [vmem:[#allocation7 + $0x98] sm:$0xff]  ;;  %v842_v42 = vrot.slane %v835_v12, %v1996_v17  ;;  %s1336_s6 = sshll.u32 %s1638_s3, 4  ;;  %s2835_s6 = int_to_ptr.vmem [resolvable:$true] %s1336_s6 }
 0x1cb   :  { %3034 = vst [vmem:[#allocation19_spill] sm:$0xff] %v2194_v50  ;;  %3035 = vst [vmem:[#allocation21_spill] sm:$0xff] %v2201_v0  ;;  %v2227_v7 = vld [vmem:[#allocation7 + $0xb0] sm:$0xff]  ;;  %v2233_v55 = vld [vmem:[#allocation7 + $0xb8] sm:$0xff]  ;;  %s1604_s7 = scalar_lea.vmem %s2835_s6, 6400  ;;  %p1609_p11 = scmp.lt.s32.totalorder %s2835_s6, %s2835_s6 }
 0x1cc   :  { %3036 = vst [vmem:[#allocation39_spill] sm:$0xff] %v2203_v56  ;;  %3037 = vst [vmem:[#allocation40_spill] sm:$0xff] %v2211_v46  ;;  %v844_v12 = vsub.f32 %v823_v60, %v842_v42  ;;  %v2235_v62 = vld [vmem:[#allocation7 + $0xc0] sm:$0xff]  ;;  %v3044_v42 = vsub.s32 1, %v1973_v45  ;;  %p1605_p10 = scmp.ne.s32.totalorder %s2835_s6, %s1604_s7  ;;  %p1610_p12 = scmp.lt.s32.totalorder %s1604_s7, %s1604_s7 }
 0x1cd   :  { %3038 = vst [vmem:[#allocation41_spill] sm:$0xff] %v2213_v49  ;;  %3039 = vst [vmem:[#allocation42_spill] sm:$0xff] %v2220_v24 }
 0x1ce   :  { %3041 = vst [vmem:[#allocation44_spill] sm:$0xff] %v2227_v7  ;;  %3042 = vst [vmem:[#allocation45_spill] sm:$0xff] %v2233_v55  ;;  %v849_v60 = vrot.slane %v844_v12, %v1976_v6  ;;  %v853_v17 = vrot.slane %v844_v12, %v3044_v42  ;;  %p1611_p13 = por %p1610_p12, %p1609_p11 }
 0x1cf   :  { %3043 = vst [vmem:[#allocation46_spill] sm:$0xff] %v2235_v62 }
 0x1d0   :  { %v2254_v29 = vadd.f32 %v849_v60, %v2030_v18  ;;  %v2257_v6 = vadd.f32 %v853_v17, %v2105_v32  ;;  %v2260_v45 = vadd.f32 %v849_v60, %v2033_v16  ;;  %v2263_v12 = vadd.f32 %v853_v17, %v2108_v40  ;;  %p1612_p0 = pnand %p1611_p13, %p1605_p10 }
 0x1d1   :  { %v2266_v42 = vadd.f32 %v849_v60, %v2036_v3  ;;  %v2269_v23 = vadd.f32 %v853_v17, %v2111_v52  ;;  %v2272_v28 = vadd.f32 %v849_v60, %v2039_v38  ;;  %v2275_v18 = vadd.f32 %v853_v17, %v2114_v2 }
 0x1d2   :  { %3045 = vst [vmem:[#allocation47_spill] sm:$0xff] %v2254_v29  ;;  %3046 = vst [vmem:[#allocation48_spill] sm:$0xff] %v2257_v6  ;;  %v2278_v32 = vadd.f32 %v849_v60, %v2042_v43  ;;  %v2281_v16 = vadd.f32 %v853_v17, %v2117_v22  ;;  %v2284_v40 = vadd.f32 %v849_v60, %v2045_v14 }
 0x1d3   :  { %3047 = vst [vmem:[#allocation49_spill] sm:$0xff] %v2260_v45  ;;  %3048 = vst [vmem:[#allocation50_spill] sm:$0xff] %v2263_v12  ;;  %v2287_v3 = vadd.f32 %v853_v17, %v2120_v34  ;;  %v2290_v52 = vadd.f32 %v849_v60, %v2048_v37  ;;  %v2293_v38 = vadd.f32 %v853_v17, %v2123_v54 }
 0x1d4   :  { %3049 = vst [vmem:[#allocation51_spill] sm:$0xff] %v2266_v42  ;;  %3050 = vst [vmem:[#allocation52_spill] sm:$0xff] %v2269_v23  ;;  %v2296_v2 = vadd.f32 %v849_v60, %v2051_v59  ;;  %v2299_v43 = vadd.f32 %v853_v17, %v2126_v61  ;;  %v2302_v22 = vadd.f32 %v849_v60, %v2054_v63  ;;  %v2432_v62 = vadd.f32 3.0, %v2281_v16 }
 0x1d5   :  { %3051 = vst [vmem:[#allocation53_spill] sm:$0xff] %v2272_v28  ;;  %3052 = vst [vmem:[#allocation54_spill] sm:$0xff] %v2275_v18  ;;  %v2305_v14 = vadd.f32 %v853_v17, %v2129_v4  ;;  %v2308_v34 = vadd.f32 %v849_v60, %v2057_v11  ;;  %v2311_v37 = vadd.f32 %v853_v17, %v2132_v15  ;;  %v2435_v46 = vadd.f32 3.0, %v2284_v40 }
 0x1d6   :  { %3053 = vst [vmem:[#allocation55_spill] sm:$0xff] %v2278_v32  ;;  %3054 = vst [vmem:[#allocation56_spill] sm:$0xff] %v2281_v16  ;;  %v2314_v54 = vadd.f32 %v849_v60, %v2060_v19  ;;  %v2317_v59 = vadd.f32 %v853_v17, %v2135_v25  ;;  %v2320_v61 = vadd.f32 %v849_v60, %v2063_v31  ;;  %v2438_v0 = vadd.f32 3.0, %v2287_v3 }
 0x1d7   :  { %3055 = vst [vmem:[#allocation57_spill] sm:$0xff] %v2284_v40  ;;  %3056 = vst [vmem:[#allocation58_spill] sm:$0xff] %v2287_v3  ;;  %v2323_v63 = vadd.f32 %v853_v17, %v2138_v57  ;;  %v2326_v4 = vadd.f32 %v849_v60, %v2066_v39  ;;  %v2329_v11 = vadd.f32 %v853_v17, %v2141_v26  ;;  %v2441_v5 = vadd.f32 3.0, %v2290_v52 }
 0x1d8   :  { %3057 = vst [vmem:[#allocation59_spill] sm:$0xff] %v2290_v52  ;;  %3058 = vst [vmem:[#allocation60_spill] sm:$0xff] %v2293_v38  ;;  %v2332_v15 = vadd.f32 %v849_v60, %v2069_v51  ;;  %v2335_v19 = vadd.f32 %v853_v17, %v2144_v41  ;;  %v2338_v25 = vadd.f32 %v849_v60, %v2072_v1  ;;  %v2444_v35 = vadd.f32 3.0, %v2293_v38 }
 0x1d9   :  { %3059 = vst [vmem:[#allocation61_spill] sm:$0xff] %v2296_v2  ;;  %3060 = vst [vmem:[#allocation62_spill] sm:$0xff] %v2299_v43  ;;  %v2341_v31 = vadd.f32 %v853_v17, %v2147_v8  ;;  %v2344_v57 = vadd.f32 %v849_v60, %v2075_v21  ;;  %v2347_v39 = vadd.f32 %v853_v17, %v2150_v27  ;;  %v2453_v16 = vadd.f32 3.0, %v2302_v22 }
 0x1da   :  { %3061 = vst [vmem:[#allocation63_spill] sm:$0xff] %v2302_v22  ;;  %3062 = vst [vmem:[#allocation64_spill] sm:$0xff] %v2305_v14  ;;  %v2350_v26 = vadd.f32 %v849_v60, %v2078_v33  ;;  %v2353_v51 = vadd.f32 %v853_v17, %v2153_v58  ;;  %v2356_v41 = vadd.f32 %v849_v60, %v2081_v53  ;;  %v3085_v58 = vld [vmem:[#allocation34_spill] sm:$0xff]  ;;  %v3087_v53 = vld [vmem:[#allocation23_spill] sm:$0xff]  ;;  %v2456_v40 = vadd.f32 3.0, %v2305_v14 }
 0x1db   :  { %3063 = vst [vmem:[#allocation65_spill] sm:$0xff] %v2308_v34  ;;  %3064 = vst [vmem:[#allocation66_spill] sm:$0xff] %v2311_v37  ;;  %v2359_v1 = vadd.f32 %v853_v17, %v2156_v9  ;;  %v2362_v8 = vadd.f32 %v849_v60, %v2084_v13  ;;  %v2365_v21 = vadd.f32 %v853_v17, %v2159_v30  ;;  %v3089_v9 = vld [vmem:[#allocation35_spill] sm:$0xff]  ;;  %v3091_v13 = vld [vmem:[#allocation24_spill] sm:$0xff]  ;;  %v2459_v3 = vadd.f32 3.0, %v2308_v34 }
 0x1dc   :  { %3065 = vst [vmem:[#allocation67_spill] sm:$0xff] %v2314_v54  ;;  %3066 = vst [vmem:[#allocation68_spill] sm:$0xff] %v2317_v59  ;;  %v2368_v27 = vadd.f32 %v849_v60, %v2087_v47  ;;  %v2371_v33 = vadd.f32 %v853_v17, %v2166_v10  ;;  %v2374_v50 = vadd.f32 %v849_v60, %v3085_v58  ;;  %v3093_v30 = vld [vmem:[#allocation36_spill] sm:$0xff]  ;;  %v3097_v10 = vld [vmem:[#allocation37_spill] sm:$0xff]  ;;  %v2462_v52 = vadd.f32 3.0, %v2311_v37 }
 0x1dd   :  { %3067 = vst [vmem:[#allocation69_spill] sm:$0xff] %v2320_v61  ;;  %3068 = vst [vmem:[#allocation70_spill] sm:$0xff] %v2323_v63  ;;  %v2377_v20 = vadd.f32 %v853_v17, %v3087_v53  ;;  %v2380_v44 = vadd.f32 %v849_v60, %v3089_v9  ;;  %v2383_v56 = vadd.f32 %v853_v17, %v3091_v13  ;;  %v3095_v47 = vld [vmem:[#allocation12_spill] sm:$0xff]  ;;  %v3099_v58 = vld [vmem:[#allocation15_spill] sm:$0xff]  ;;  %v2404_v13 = vadd.f32 3.0, %v2254_v29 }
 0x1de   :  { %3069 = vst [vmem:[#allocation71_spill] sm:$0xff] %v2326_v4  ;;  %3070 = vst [vmem:[#allocation72_spill] sm:$0xff] %v2329_v11  ;;  %v2386_v36 = vadd.f32 %v849_v60, %v3093_v30  ;;  %v2389_v55 = vadd.f32 %v853_v17, %v3095_v47  ;;  %v2392_v7 = vadd.f32 %v849_v60, %v3097_v10  ;;  %v3101_v53 = vld [vmem:[#allocation38_spill] sm:$0xff]  ;;  %v3103_v9 = vld [vmem:[#allocation16_spill] sm:$0xff]  ;;  %v2408_v47 = vadd.f32 3.0, %v2257_v6 }
 0x1df   :  { %3071 = vst [vmem:[#allocation73_spill] sm:$0xff] %v2332_v15  ;;  %3072 = vst [vmem:[#allocation74_spill] sm:$0xff] %v2335_v19  ;;  %v2395_v48 = vadd.f32 %v853_v17, %v3099_v58  ;;  %v2398_v24 = vadd.f32 %v849_v60, %v3101_v53  ;;  %v2401_v49 = vadd.f32 %v853_v17, %v3103_v9  ;;  %v2411_v10 = vadd.f32 3.0, %v2260_v45 }
 0x1e0   :  { %3073 = vst [vmem:[#allocation75_spill] sm:$0xff] %v2338_v25  ;;  %3074 = vst [vmem:[#allocation76_spill] sm:$0xff] %v2341_v31  ;;  %v2414_v58 = vadd.f32 3.0, %v2263_v12  ;;  %v2417_v60 = vadd.f32 3.0, %v2266_v42  ;;  %v2420_v17 = vadd.f32 3.0, %v2269_v23  ;;  %v2423_v53 = vadd.f32 3.0, %v2272_v28 }
 0x1e1   :  { %3075 = vst [vmem:[#allocation77_spill] sm:$0xff] %v2344_v57  ;;  %3076 = vst [vmem:[#allocation78_spill] sm:$0xff] %v2347_v39  ;;  %v2426_v9 = vadd.f32 3.0, %v2275_v18  ;;  %v2429_v30 = vadd.f32 3.0, %v2278_v32  ;;  %v2447_v18 = vadd.f32 3.0, %v2296_v2  ;;  %v2450_v32 = vadd.f32 3.0, %v2299_v43 }
 0x1e2   :  { %3077 = vst [vmem:[#allocation79_spill] sm:$0xff] %v2350_v26  ;;  %3078 = vst [vmem:[#allocation80_spill] sm:$0xff] %v2353_v51  ;;  %v2465_v38 = vadd.f32 3.0, %v2314_v54  ;;  %v2468_v2 = vadd.f32 3.0, %v2317_v59  ;;  %v2471_v43 = vadd.f32 3.0, %v2320_v61  ;;  %v2474_v22 = vadd.f32 3.0, %v2323_v63 }
 0x1e3   :  { %3079 = vst [vmem:[#allocation81_spill] sm:$0xff] %v2356_v41  ;;  %3080 = vst [vmem:[#allocation82_spill] sm:$0xff] %v2359_v1  ;;  %v2477_v14 = vadd.f32 3.0, %v2326_v4  ;;  %v2480_v34 = vadd.f32 3.0, %v2329_v11  ;;  %v2483_v37 = vadd.f32 3.0, %v2332_v15  ;;  %v2486_v54 = vadd.f32 3.0, %v2335_v19 }
 0x1e4   :  { %3081 = vst [vmem:[#allocation83_spill] sm:$0xff] %v2362_v8  ;;  %3082 = vst [vmem:[#allocation84_spill] sm:$0xff] %v2365_v21  ;;  %v2489_v59 = vadd.f32 3.0, %v2338_v25  ;;  %v2492_v61 = vadd.f32 3.0, %v2341_v31  ;;  %v2495_v63 = vadd.f32 3.0, %v2344_v57  ;;  %v2498_v4 = vadd.f32 3.0, %v2347_v39 }
 0x1e5   :  { %3083 = vst [vmem:[#allocation85_spill] sm:$0xff] %v2368_v27  ;;  %3084 = vst [vmem:[#allocation86_spill] sm:$0xff] %v2371_v33  ;;  %v2501_v11 = vadd.f32 3.0, %v2350_v26  ;;  %v2504_v15 = vadd.f32 3.0, %v2353_v51  ;;  %v2507_v19 = vadd.f32 3.0, %v2356_v41  ;;  %v2510_v25 = vadd.f32 3.0, %v2359_v1 }
 0x1e6   :  { %3086 = vst [vmem:[#allocation34_spill] sm:$0xff] %v2374_v50  ;;  %3088 = vst [vmem:[#allocation23_spill] sm:$0xff] %v2377_v20  ;;  %v2513_v31 = vadd.f32 3.0, %v2362_v8  ;;  %v2516_v57 = vadd.f32 3.0, %v2365_v21  ;;  %v2519_v39 = vadd.f32 3.0, %v2368_v27  ;;  %v2522_v26 = vadd.f32 3.0, %v2371_v33 }
 0x1e7   :  { %3090 = vst [vmem:[#allocation35_spill] sm:$0xff] %v2380_v44  ;;  %3092 = vst [vmem:[#allocation24_spill] sm:$0xff] %v2383_v56  ;;  %v2525_v51 = vadd.f32 3.0, %v2374_v50  ;;  %v2528_v41 = vadd.f32 3.0, %v2377_v20  ;;  %v2531_v1 = vadd.f32 3.0, %v2380_v44  ;;  %v2534_v8 = vadd.f32 3.0, %v2383_v56 }
 0x1e8   :  { %3094 = vst [vmem:[#allocation36_spill] sm:$0xff] %v2386_v36  ;;  %3096 = vst [vmem:[#allocation12_spill] sm:$0xff] %v2389_v55  ;;  %v2537_v21 = vadd.f32 3.0, %v2386_v36  ;;  %v2540_v27 = vadd.f32 3.0, %v2389_v55  ;;  %v2543_v33 = vadd.f32 3.0, %v2392_v7  ;;  %v2546_v50 = vadd.f32 3.0, %v2395_v48 }
 0x1e9   :  { %3098 = vst [vmem:[#allocation37_spill] sm:$0xff] %v2392_v7  ;;  %3100 = vst [vmem:[#allocation15_spill] sm:$0xff] %v2395_v48  ;;  %v2549_v20 = vadd.f32 3.0, %v2398_v24  ;;  %v2552_v44 = vadd.f32 3.0, %v2401_v49  ;;  %v956_v56 = vmax.f32 %v2404_v13, 0.0  ;;  %v957_v36 = vmax.f32 %v2408_v47, 0.0 }
 0x1ea   :  { %3102 = vst [vmem:[#allocation38_spill] sm:$0xff] %v2398_v24  ;;  %3104 = vst [vmem:[#allocation16_spill] sm:$0xff] %v2401_v49  ;;  %v958_v28 = vmax.f32 %v2411_v10, 0.0  ;;  %v959_v55 = vmax.f32 %v2414_v58, 0.0  ;;  %v960_v7 = vmax.f32 %v2417_v60, 0.0  ;;  %v961_v23 = vmax.f32 %v2420_v17, 0.0 }
 0x1eb   :  { %v962_v48 = vmax.f32 %v2423_v53, 0.0  ;;  %v963_v24 = vmax.f32 %v2426_v9, 0.0  ;;  %v964_v42 = vmax.f32 %v2429_v30, 0.0  ;;  %v965_v49 = vmax.f32 %v2432_v62, 0.0 }
 0x1ec   :  { %v966_v13 = vmax.f32 %v2435_v46, 0.0  ;;  %v967_v47 = vmax.f32 %v2438_v0, 0.0  ;;  %v968_v10 = vmax.f32 %v2441_v5, 0.0  ;;  %v969_v58 = vmax.f32 %v2444_v35, 0.0 }
 0x1ed   :  { %v970_v60 = vmax.f32 %v2447_v18, 0.0  ;;  %v971_v17 = vmax.f32 %v2450_v32, 0.0  ;;  %v972_v53 = vmax.f32 %v2453_v16, 0.0  ;;  %v973_v9 = vmax.f32 %v2456_v40, 0.0 }
 0x1ee   :  { %v974_v30 = vmax.f32 %v2459_v3, 0.0  ;;  %v975_v62 = vmax.f32 %v2462_v52, 0.0  ;;  %v976_v46 = vmax.f32 %v2465_v38, 0.0  ;;  %v977_v0 = vmax.f32 %v2468_v2, 0.0 }
 0x1ef   :  { %v978_v5 = vmax.f32 %v2471_v43, 0.0  ;;  %v979_v35 = vmax.f32 %v2474_v22, 0.0  ;;  %v980_v18 = vmax.f32 %v2477_v14, 0.0  ;;  %v981_v32 = vmax.f32 %v2480_v34, 0.0 }
 0x1f0   :  { %v982_v16 = vmax.f32 %v2483_v37, 0.0  ;;  %v983_v40 = vmax.f32 %v2486_v54, 0.0  ;;  %v984_v3 = vmax.f32 %v2489_v59, 0.0  ;;  %v985_v52 = vmax.f32 %v2492_v61, 0.0 }
 0x1f1   :  { %v986_v38 = vmax.f32 %v2495_v63, 0.0  ;;  %v987_v2 = vmax.f32 %v2498_v4, 0.0  ;;  %v988_v43 = vmax.f32 %v2501_v11, 0.0  ;;  %v989_v22 = vmax.f32 %v2504_v15, 0.0 }
 0x1f2   :  { %v990_v14 = vmax.f32 %v2507_v19, 0.0  ;;  %v991_v34 = vmax.f32 %v2510_v25, 0.0  ;;  %v992_v37 = vmax.f32 %v2513_v31, 0.0  ;;  %v993_v54 = vmax.f32 %v2516_v57, 0.0 }
 0x1f3   :  { %v994_v59 = vmax.f32 %v2519_v39, 0.0  ;;  %v995_v61 = vmax.f32 %v2522_v26, 0.0  ;;  %v996_v63 = vmax.f32 %v2525_v51, 0.0  ;;  %v997_v4 = vmax.f32 %v2528_v41, 0.0 }
 0x1f4   :  { %v998_v11 = vmax.f32 %v2531_v1, 0.0  ;;  %v999_v15 = vmax.f32 %v2534_v8, 0.0  ;;  %v1000_v19 = vmax.f32 %v2537_v21, 0.0  ;;  %v1001_v25 = vmax.f32 %v2540_v27, 0.0 }
 0x1f5   :  { %v1002_v31 = vmax.f32 %v2543_v33, 0.0  ;;  %v1003_v57 = vmax.f32 %v2546_v50, 0.0  ;;  %v1004_v39 = vmax.f32 %v2549_v20, 0.0  ;;  %v1005_v26 = vmax.f32 %v2552_v44, 0.0 }
 0x1f6   :  { %v1006_v12 = vmin.f32 %v956_v56, 6.0  ;;  %v1007_v51 = vmin.f32 %v957_v36, 6.0  ;;  %v1008_v45 = vmin.f32 %v958_v28, 6.0  ;;  %v1009_v41 = vmin.f32 %v959_v55, 6.0 }
 0x1f7   :  { %v1010_v6 = vmin.f32 %v960_v7, 6.0  ;;  %v1011_v1 = vmin.f32 %v961_v23, 6.0  ;;  %v1012_v29 = vmin.f32 %v962_v48, 6.0  ;;  %v1013_v8 = vmin.f32 %v963_v24, 6.0 }
 0x1f8   :  { %v1014_v21 = vmin.f32 %v964_v42, 6.0  ;;  %v1015_v27 = vmin.f32 %v965_v49, 6.0  ;;  %v1016_v33 = vmin.f32 %v966_v13, 6.0  ;;  %v1017_v50 = vmin.f32 %v967_v47, 6.0 }
 0x1f9   :  { %v1018_v20 = vmin.f32 %v968_v10, 6.0  ;;  %v1019_v44 = vmin.f32 %v969_v58, 6.0  ;;  %v1020_v56 = vmin.f32 %v970_v60, 6.0  ;;  %v1021_v36 = vmin.f32 %v971_v17, 6.0 }
 0x1fa   :  { %v1022_v28 = vmin.f32 %v972_v53, 6.0  ;;  %v1023_v55 = vmin.f32 %v973_v9, 6.0  ;;  %v1024_v7 = vmin.f32 %v974_v30, 6.0  ;;  %v1025_v23 = vmin.f32 %v975_v62, 6.0 }
 0x1fb   :  { %v1026_v48 = vmin.f32 %v976_v46, 6.0  ;;  %v1027_v24 = vmin.f32 %v977_v0, 6.0  ;;  %v1028_v42 = vmin.f32 %v978_v5, 6.0  ;;  %v1029_v49 = vmin.f32 %v979_v35, 6.0 }
 0x1fc   :  { %v1030_v13 = vmin.f32 %v980_v18, 6.0  ;;  %v1031_v47 = vmin.f32 %v981_v32, 6.0  ;;  %v1032_v10 = vmin.f32 %v982_v16, 6.0  ;;  %v1033_v58 = vmin.f32 %v983_v40, 6.0 }
 0x1fd   :  { %v1034_v60 = vmin.f32 %v984_v3, 6.0  ;;  %v1035_v17 = vmin.f32 %v985_v52, 6.0  ;;  %v1036_v53 = vmin.f32 %v986_v38, 6.0  ;;  %v1037_v9 = vmin.f32 %v987_v2, 6.0 }
 0x1fe   :  { %v1038_v30 = vmin.f32 %v988_v43, 6.0  ;;  %v1039_v62 = vmin.f32 %v989_v22, 6.0  ;;  %v1040_v46 = vmin.f32 %v990_v14, 6.0  ;;  %v1041_v0 = vmin.f32 %v991_v34, 6.0 }
 0x1ff   :  { %v1042_v5 = vmin.f32 %v992_v37, 6.0  ;;  %v1043_v35 = vmin.f32 %v993_v54, 6.0  ;;  %v1044_v18 = vmin.f32 %v994_v59, 6.0  ;;  %v1045_v32 = vmin.f32 %v995_v61, 6.0  ;;  %v3105_v37 = vld [vmem:[#allocation47_spill] sm:$0xff]  ;;  %v3106_v59 = vld [vmem:[#allocation48_spill] sm:$0xff] }
 0x200   :  { %v1046_v16 = vmin.f32 %v996_v63, 6.0  ;;  %v1047_v40 = vmin.f32 %v997_v4, 6.0  ;;  %v1048_v3 = vmin.f32 %v998_v11, 6.0  ;;  %v1049_v52 = vmin.f32 %v999_v15, 6.0  ;;  %v3107_v63 = vld [vmem:[#allocation49_spill] sm:$0xff]  ;;  %v3108_v11 = vld [vmem:[#allocation50_spill] sm:$0xff] }
 0x201   :  { %v1050_v38 = vmin.f32 %v1000_v19, 6.0  ;;  %v1051_v2 = vmin.f32 %v1001_v25, 6.0  ;;  %v1052_v43 = vmin.f32 %v1002_v31, 6.0  ;;  %v1053_v22 = vmin.f32 %v1003_v57, 6.0  ;;  %v3109_v19 = vld [vmem:[#allocation51_spill] sm:$0xff]  ;;  %v3110_v31 = vld [vmem:[#allocation52_spill] sm:$0xff] }
 0x202   :  { %v1054_v14 = vmin.f32 %v1004_v39, 6.0  ;;  %v1055_v34 = vmin.f32 %v1005_v26, 6.0  ;;  %v1056_v54 = vmul.f32 %v1006_v12, %v3105_v37  ;;  %v1057_v61 = vmul.f32 %v1007_v51, %v3106_v59  ;;  %v3111_v39 = vld [vmem:[#allocation53_spill] sm:$0xff]  ;;  %v3112_v12 = vld [vmem:[#allocation54_spill] sm:$0xff]  ;;  %v3113_v51 = vld [vmem:[#allocation55_spill] sm:$0xff] }
 0x203   :  { %v1058_v4 = vmul.f32 %v1008_v45, %v3107_v63  ;;  %v1059_v15 = vmul.f32 %v1009_v41, %v3108_v11  ;;  %v1060_v25 = vmul.f32 %v1010_v6, %v3109_v19  ;;  %v1061_v57 = vmul.f32 %v1011_v1, %v3110_v31  ;;  %v3114_v45 = vld [vmem:[#allocation56_spill] sm:$0xff]  ;;  %v3115_v11 = vld [vmem:[#allocation57_spill] sm:$0xff]  ;;  %v3116_v6 = vld [vmem:[#allocation58_spill] sm:$0xff] }
 0x204   :  { %v1062_v26 = vmul.f32 %v1012_v29, %v3111_v39  ;;  %v1063_v37 = vmul.f32 %v1013_v8, %v3112_v12  ;;  %v1064_v59 = vmul.f32 %v1014_v21, %v3113_v51  ;;  %v1065_v63 = vmul.f32 %v1015_v27, %v3114_v45  ;;  %v3117_v1 = vld [vmem:[#allocation59_spill] sm:$0xff]  ;;  %v3118_v29 = vld [vmem:[#allocation60_spill] sm:$0xff]  ;;  %v3119_v8 = vld [vmem:[#allocation61_spill] sm:$0xff] }
 0x205   :  { %v1066_v41 = vmul.f32 %v1016_v33, %v3115_v11  ;;  %v1067_v19 = vmul.f32 %v1017_v50, %v3116_v6  ;;  %v1068_v31 = vmul.f32 %v1018_v20, %v3117_v1  ;;  %v1069_v39 = vmul.f32 %v1019_v44, %v3118_v29  ;;  %v3120_v21 = vld [vmem:[#allocation62_spill] sm:$0xff]  ;;  %v3121_v27 = vld [vmem:[#allocation63_spill] sm:$0xff]  ;;  %v3122_v11 = vld [vmem:[#allocation64_spill] sm:$0xff] }
 0x206   :  { %v1070_v12 = vmul.f32 %v1020_v56, %v3119_v8  ;;  %v1071_v51 = vmul.f32 %v1021_v36, %v3120_v21  ;;  %v1072_v45 = vmul.f32 %v1022_v28, %v3121_v27  ;;  %v1073_v33 = vmul.f32 %v1023_v55, %v3122_v11  ;;  %v3123_v6 = vld [vmem:[#allocation65_spill] sm:$0xff]  ;;  %v3124_v1 = vld [vmem:[#allocation66_spill] sm:$0xff]  ;;  %v3125_v29 = vld [vmem:[#allocation67_spill] sm:$0xff] }
 0x207   :  { %v1074_v50 = vmul.f32 %v1024_v7, %v3123_v6  ;;  %v1075_v20 = vmul.f32 %v1025_v23, %v3124_v1  ;;  %v1076_v44 = vmul.f32 %v1026_v48, %v3125_v29  ;;  %v3126_v8 = vld [vmem:[#allocation68_spill] sm:$0xff]  ;;  %v3127_v21 = vld [vmem:[#allocation69_spill] sm:$0xff]  ;;  %v3128_v27 = vld [vmem:[#allocation70_spill] sm:$0xff] }
 0x208   :  { %v1077_v56 = vmul.f32 %v1027_v24, %v3126_v8  ;;  %v1078_v36 = vmul.f32 %v1028_v42, %v3127_v21  ;;  %v1079_v28 = vmul.f32 %v1029_v49, %v3128_v27  ;;  %v3129_v11 = vld [vmem:[#allocation71_spill] sm:$0xff]  ;;  %v3130_v6 = vld [vmem:[#allocation72_spill] sm:$0xff]  ;;  %v3131_v1 = vld [vmem:[#allocation73_spill] sm:$0xff] }
 0x209   :  { %v1080_v55 = vmul.f32 %v1030_v13, %v3129_v11  ;;  %v1081_v7 = vmul.f32 %v1031_v47, %v3130_v6  ;;  %v1082_v23 = vmul.f32 %v1032_v10, %v3131_v1  ;;  %v3132_v29 = vld [vmem:[#allocation74_spill] sm:$0xff]  ;;  %v3133_v8 = vld [vmem:[#allocation75_spill] sm:$0xff]  ;;  %v3134_v21 = vld [vmem:[#allocation76_spill] sm:$0xff] }
 0x20a   :  { %v1083_v48 = vmul.f32 %v1033_v58, %v3132_v29  ;;  %v1084_v24 = vmul.f32 %v1034_v60, %v3133_v8  ;;  %v2634_v42 = vmul.f32 %v1035_v17, %v3134_v21  ;;  %v3135_v27 = vld [vmem:[#allocation77_spill] sm:$0xff]  ;;  %v3136_v11 = vld [vmem:[#allocation78_spill] sm:$0xff]  ;;  %v3137_v6 = vld [vmem:[#allocation79_spill] sm:$0xff] }
 0x20b   :  { %v2637_v49 = vmul.f32 %v1036_v53, %v3135_v27  ;;  %v2640_v13 = vmul.f32 %v1037_v9, %v3136_v11  ;;  %v2643_v47 = vmul.f32 %v1038_v30, %v3137_v6  ;;  %v3138_v1 = vld [vmem:[#allocation80_spill] sm:$0xff]  ;;  %v3139_v29 = vld [vmem:[#allocation81_spill] sm:$0xff]  ;;  %v3140_v8 = vld [vmem:[#allocation82_spill] sm:$0xff] }
 0x20c   :  { %v2646_v10 = vmul.f32 %v1039_v62, %v3138_v1  ;;  %v2649_v58 = vmul.f32 %v1040_v46, %v3139_v29  ;;  %v2652_v60 = vmul.f32 %v1041_v0, %v3140_v8  ;;  %v3141_v17 = vld [vmem:[#allocation83_spill] sm:$0xff]  ;;  %v3142_v53 = vld [vmem:[#allocation84_spill] sm:$0xff]  ;;  %v3143_v9 = vld [vmem:[#allocation85_spill] sm:$0xff] }
 0x20d   :  { %v2655_v21 = vmul.f32 %v1042_v5, %v3141_v17  ;;  %v2658_v27 = vmul.f32 %v1043_v35, %v3142_v53  ;;  %v2661_v11 = vmul.f32 %v1044_v18, %v3143_v9  ;;  %v3144_v30 = vld [vmem:[#allocation86_spill] sm:$0xff]  ;;  %v3146_v46 = vld [vmem:[#allocation23_spill] sm:$0xff]  ;;  %v3149_v5 = vld [vmem:[#allocation24_spill] sm:$0xff] }
 0x20e   :  { %v2664_v6 = vmul.f32 %v1045_v32, %v3144_v30  ;;  %v3145_v62 = vld [vmem:[#allocation34_spill] sm:$0xff]  ;;  %v2670_v29 = vmul.f32 %v1047_v40, %v3146_v46  ;;  %v3147_v0 = vld [vmem:[#allocation35_spill] sm:$0xff]  ;;  %v2676_v17 = vmul.f32 %v1049_v52, %v3149_v5  ;;  %v3150_v35 = vld [vmem:[#allocation36_spill] sm:$0xff]  ;;  %v1108_v5 = vmul.f32 0.16666667, %v1058_v4 }
 0x20f   :  { %v2667_v1 = vmul.f32 %v1046_v16, %v3145_v62  ;;  %v2673_v8 = vmul.f32 %v1048_v3, %v3147_v0  ;;  %v2679_v53 = vmul.f32 %v1050_v38, %v3150_v35  ;;  %v3152_v18 = vld [vmem:[#allocation12_spill] sm:$0xff]  ;;  %v3154_v32 = vld [vmem:[#allocation37_spill] sm:$0xff]  ;;  %v3156_v16 = vld [vmem:[#allocation15_spill] sm:$0xff]  ;;  %v1106_v3 = vmul.f32 0.16666667, %v1056_v54 }
 0x210   :  { %v2682_v9 = vmul.f32 %v1051_v2, %v3152_v18  ;;  %v2685_v30 = vmul.f32 %v1052_v43, %v3154_v32  ;;  %v2688_v62 = vmul.f32 %v1053_v22, %v3156_v16  ;;  %v3157_v40 = vld [vmem:[#allocation38_spill] sm:$0xff]  ;;  %v1107_v0 = vmul.f32 0.16666667, %v1057_v61 }
 0x211   :  { %3148 = vst [vmem:[#allocation47_spill] sm:$0xff] %v2673_v8  ;;  %3151 = vst [vmem:[#allocation48_spill] sm:$0xff] %v2679_v53  ;;  %v2691_v46 = vmul.f32 %v1054_v14, %v3157_v40  ;;  %v3159_v8 = vld [vmem:[#allocation16_spill] sm:$0xff]  ;;  %v1109_v38 = vmul.f32 0.16666667, %v1059_v15 }
 0x212   :  { %3153 = vst [vmem:[#allocation49_spill] sm:$0xff] %v2682_v9  ;;  %3155 = vst [vmem:[#allocation50_spill] sm:$0xff] %v2685_v30  ;;  %v2694_v52 = vmul.f32 %v1055_v34, %v3159_v8  ;;  %v1110_v35 = vmul.f32 0.16666667, %v1060_v25  ;;  %v1111_v53 = vmul.f32 0.16666667, %v1061_v57 }
 0x213   :  { %3158 = vst [vmem:[#allocation51_spill] sm:$0xff] %v2691_v46  ;;  %v1112_v2 = vmul.f32 0.16666667, %v1062_v26  ;;  %v1113_v18 = vmul.f32 0.16666667, %v1063_v37  ;;  %v3160_v9 = vld [vmem:[#allocation25_spill] sm:$0xff] }
 0x214   :  { %v3161_v43 = vunpack.c.l.bf16 %v3160_v9  ;;  %v1114_v30 = vmul.f32 0.16666667, %v1064_v59  ;;  %v1115_v22 = vmul.f32 0.16666667, %v1065_v63  ;;  %v1116_v16 = vmul.f32 0.16666667, %v1066_v41 }
 0x215   :  { %v3162_v14 = vunpack.c.h.bf16 %v3160_v9  ;;  %v1117_v54 = vmul.f32 0.16666667, %v1067_v19  ;;  %v1118_v61 = vmul.f32 0.16666667, %v1068_v31  ;;  %v1119_v46 = vmul.f32 0.16666667, %v1069_v39 }
 0x216   :  { %v1231_v32 = vadd.f32 %v3161_v43, %v1106_v3  ;;  %v3163_v34 = vld [vmem:[#allocation26_spill] sm:$0xff]  ;;  %v1120_v15 = vmul.f32 0.16666667, %v1070_v12  ;;  %v1121_v25 = vmul.f32 0.16666667, %v1071_v51  ;;  %v3166_v3 = vld [vmem:[#allocation27_spill] sm:$0xff] }
 0x217   :  { %v1232_v40 = vadd.f32 %v3162_v14, %v1107_v0  ;;  %v3164_v8 = vunpack.c.l.bf16 %v3163_v34  ;;  %v1122_v57 = vmul.f32 0.16666667, %v1072_v45  ;;  %v3165_v26 = vunpack.c.h.bf16 %v3163_v34 }
 0x218   :  { %1281 = vst [vmem:[#allocation8] sm:$0xff] %v1231_v32  ;;  %v1123_v59 = vmul.f32 0.16666667, %v1073_v33  ;;  %v1124_v63 = vmul.f32 0.16666667, %v1074_v50  ;;  %v3167_v9 = vunpack.c.l.bf16 %v3166_v3  ;;  %v3169_v32 = vld [vmem:[#allocation28_spill] sm:$0xff] }
 0x219   :  { %v1233_v4 = vadd.f32 %v3164_v8, %v1108_v5  ;;  %v1234_v37 = vadd.f32 %v3165_v26, %v1109_v38  ;;  %1282 = vst [vmem:[#allocation8 + $0x8] sm:$0xff] %v1232_v40  ;;  %v1125_v41 = vmul.f32 0.16666667, %v1075_v20  ;;  %v1126_v19 = vmul.f32 0.16666667, %v1076_v44 }
 0x21a   :  { %v1235_v0 = vadd.f32 %v3167_v9, %v1110_v35  ;;  %v1127_v31 = vmul.f32 0.16666667, %v1077_v56  ;;  %v1128_v39 = vmul.f32 0.16666667, %v1078_v36  ;;  %v3168_v5 = vunpack.c.h.bf16 %v3166_v3  ;;  %v3183_v9 = vld [vmem:[#allocation50_spill] sm:$0xff] }
 0x21b   :  { %1283 = vst [vmem:[#allocation8 + $0x10] sm:$0xff] %v1233_v4  ;;  %1284 = vst [vmem:[#allocation8 + $0x18] sm:$0xff] %v1234_v37  ;;  %v1129_v12 = vmul.f32 0.16666667, %v1079_v28  ;;  %v1130_v51 = vmul.f32 0.16666667, %v1080_v55  ;;  %v3170_v38 = vunpack.c.l.bf16 %v3169_v32  ;;  %v3171_v35 = vunpack.c.h.bf16 %v3169_v32 }
 0x21c   :  { %v1236_v43 = vadd.f32 %v3168_v5, %v1111_v53  ;;  %v1131_v45 = vmul.f32 0.16666667, %v1081_v7  ;;  %1285 = vst [vmem:[#allocation8 + $0x20] sm:$0xff] %v1235_v0  ;;  %v1132_v33 = vmul.f32 0.16666667, %v1082_v23  ;;  %v3172_v28 = vld [vmem:[#allocation29_spill] sm:$0xff] }
 0x21d   :  { %v1237_v14 = vadd.f32 %v3170_v38, %v1112_v2  ;;  %v1133_v50 = vmul.f32 0.16666667, %v1083_v48  ;;  %v1134_v20 = vmul.f32 0.16666667, %v1084_v24  ;;  %v1238_v40 = vadd.f32 %v3171_v35, %v1113_v18  ;;  %v3175_v18 = vld [vmem:[#allocation30_spill] sm:$0xff]  ;;  %v3185_v5 = vld [vmem:[#allocation51_spill] sm:$0xff] }
 0x21e   :  { %1286 = vst [vmem:[#allocation8 + $0x28] sm:$0xff] %v1236_v43  ;;  %v1135_v44 = vmul.f32 0.16666667, %v2634_v42  ;;  %v1136_v56 = vmul.f32 0.16666667, %v2637_v49  ;;  %v3173_v55 = vunpack.c.l.bf16 %v3172_v28  ;;  %v3174_v24 = vunpack.c.h.bf16 %v3172_v28  ;;  %v3186_v32 = vld [vmem:[#allocation32_spill] sm:$0xff] }
 0x21f   :  { %v1137_v36 = vmul.f32 0.16666667, %v2640_v13  ;;  %1287 = vst [vmem:[#allocation8 + $0x30] sm:$0xff] %v1237_v14  ;;  %v1138_v53 = vmul.f32 0.16666667, %v2643_v47  ;;  %1288 = vst [vmem:[#allocation8 + $0x38] sm:$0xff] %v1238_v40  ;;  %v3176_v34 = vunpack.c.l.bf16 %v3175_v18  ;;  %v3187_v38 = vunpack.c.l.bf16 %v3186_v32 }
 0x220   :  { %v1239_v7 = vadd.f32 %v3173_v55, %v1114_v30  ;;  %v1139_v23 = vmul.f32 0.16666667, %v2646_v10  ;;  %v1140_v48 = vmul.f32 0.16666667, %v2649_v58  ;;  %v1240_v2 = vadd.f32 %v3174_v24, %v1115_v22  ;;  %v3189_v28 = vld [vmem:[#allocation33_spill] sm:$0xff]  ;;  %v3192_v24 = vld [vmem:[#allocation20_spill] sm:$0xff] }
 0x221   :  { %v1141_v42 = vmul.f32 0.16666667, %v2652_v60  ;;  %v1142_v49 = vmul.f32 0.16666667, %v2655_v21  ;;  %v1143_v13 = vmul.f32 0.16666667, %v2658_v27  ;;  %v1241_v30 = vadd.f32 %v3176_v34, %v1116_v16 }
 0x222   :  { %1289 = vst [vmem:[#allocation8 + $0x40] sm:$0xff] %v1239_v7  ;;  %v1144_v47 = vmul.f32 0.16666667, %v2661_v11  ;;  %v2729_v10 = vmul.f32 0.16666667, %v2664_v6  ;;  %v3177_v22 = vunpack.c.h.bf16 %v3175_v18  ;;  %1290 = vst [vmem:[#allocation8 + $0x48] sm:$0xff] %v1240_v2  ;;  %v1245_v14 = vadd.f32 %v3187_v38, %v1120_v15 }
 0x223   :  { %v2732_v58 = vmul.f32 0.16666667, %v2667_v1  ;;  %v1147_v60 = vmul.f32 0.16666667, %v2670_v29  ;;  %v3178_v21 = vld [vmem:[#allocation47_spill] sm:$0xff]  ;;  %1291 = vst [vmem:[#allocation8 + $0x50] sm:$0xff] %v1241_v30  ;;  %v3188_v35 = vunpack.c.h.bf16 %v3186_v32  ;;  %v3190_v55 = vunpack.c.l.bf16 %v3189_v28 }
 0x224   :  { %v1242_v8 = vadd.f32 %v3177_v22, %v1117_v54  ;;  %v1148_v27 = vmul.f32 0.16666667, %v3178_v21  ;;  %v2739_v4 = vmul.f32 0.16666667, %v2676_v17  ;;  %v3179_v16 = vld [vmem:[#allocation31_spill] sm:$0xff]  ;;  %v3181_v6 = vld [vmem:[#allocation48_spill] sm:$0xff]  ;;  %v3191_v7 = vunpack.c.h.bf16 %v3189_v28 }
 0x225   :  { %v3180_v26 = vunpack.c.l.bf16 %v3179_v16  ;;  %v2744_v37 = vmul.f32 0.16666667, %v3181_v6  ;;  %v3182_v1 = vld [vmem:[#allocation49_spill] sm:$0xff]  ;;  %v2750_v54 = vmul.f32 0.16666667, %v3183_v9  ;;  %v3184_v29 = vunpack.c.h.bf16 %v3179_v16  ;;  %v3195_v30 = vld [vmem:[#allocation22_spill] sm:$0xff] }
 0x226   :  { %v2747_v3 = vmul.f32 0.16666667, %v3182_v1  ;;  %1292 = vst [vmem:[#allocation8 + $0x58] sm:$0xff] %v1242_v8  ;;  %v2755_v17 = vmul.f32 0.16666667, %v2688_v62  ;;  %v1246_v40 = vadd.f32 %v3188_v35, %v1121_v25  ;;  %v1248_v62 = vadd.f32 %v3191_v7, %v1123_v59  ;;  %v3198_v25 = vld [vmem:[#allocation13_spill] sm:$0xff] }
 0x227   :  { %v1243_v11 = vadd.f32 %v3180_v26, %v1118_v61  ;;  %v1244_v0 = vadd.f32 %v3184_v29, %v1119_v46  ;;  %v2758_v43 = vmul.f32 0.16666667, %v3185_v5  ;;  %v2761_v61 = vmul.f32 0.16666667, %v2694_v52  ;;  %1295 = vst [vmem:[#allocation8 + $0x70] sm:$0xff] %v1245_v14 }
 0x228   :  { %v1247_v46 = vadd.f32 %v3190_v55, %v1122_v57  ;;  %v3193_v2 = vunpack.c.l.bf16 %v3192_v24  ;;  %v3194_v52 = vunpack.c.h.bf16 %v3192_v24  ;;  %v3196_v22 = vunpack.c.l.bf16 %v3195_v30  ;;  %1296 = vst [vmem:[#allocation8 + $0x78] sm:$0xff] %v1246_v40  ;;  %1298 = vst [vmem:[#allocation8 + $0x88] sm:$0xff] %v1248_v62  ;;  %v3213_v40 = vld [vmem:[#allocation21_spill] sm:$0xff]  ;;  %v3219_v24 = vld [vmem:[#allocation40_spill] sm:$0xff] }
 0x229   :  { %1293 = vst [vmem:[#allocation8 + $0x60] sm:$0xff] %v1243_v11  ;;  %1294 = vst [vmem:[#allocation8 + $0x68] sm:$0xff] %v1244_v0  ;;  %v3197_v8 = vunpack.c.h.bf16 %v3195_v30  ;;  %v3199_v16 = vunpack.c.l.bf16 %v3198_v25  ;;  %v3200_v57 = vunpack.c.h.bf16 %v3198_v25  ;;  %v3201_v11 = vld [vmem:[#allocation14_spill] sm:$0xff]  ;;  %v3214_v28 = vunpack.c.l.bf16 %v3213_v40 }
 0x22a   :  { %v1249_v18 = vadd.f32 %v3193_v2, %v1124_v63  ;;  %v1250_v34 = vadd.f32 %v3194_v52, %v1125_v41  ;;  %v1251_v15 = vadd.f32 %v3196_v22, %v1126_v19  ;;  %v3202_v6 = vunpack.c.l.bf16 %v3201_v11  ;;  %v3204_v41 = vld [vmem:[#allocation17_spill] sm:$0xff]  ;;  %1297 = vst [vmem:[#allocation8 + $0x80] sm:$0xff] %v1247_v46  ;;  %v3225_v22 = vld [vmem:[#allocation42_spill] sm:$0xff] }
 0x22b   :  { %v1252_v21 = vadd.f32 %v3197_v8, %v1127_v31  ;;  %v1253_v26 = vadd.f32 %v3199_v16, %v1128_v39  ;;  %v1254_v59 = vadd.f32 %v3200_v57, %v1129_v12  ;;  %v3203_v1 = vunpack.c.h.bf16 %v3201_v11  ;;  %v3207_v39 = vld [vmem:[#allocation18_spill] sm:$0xff]  ;;  %v3222_v52 = vld [vmem:[#allocation41_spill] sm:$0xff] }
 0x22c   :  { %v1255_v63 = vadd.f32 %v3202_v6, %v1130_v51  ;;  %v3205_v29 = vunpack.c.l.bf16 %v3204_v41  ;;  %1299 = vst [vmem:[#allocation8 + $0x90] sm:$0xff] %v1249_v18  ;;  %v3206_v19 = vunpack.c.h.bf16 %v3204_v41  ;;  %v3208_v5 = vunpack.c.l.bf16 %v3207_v39  ;;  %v3210_v51 = vld [vmem:[#allocation19_spill] sm:$0xff]  ;;  %1300 = vst [vmem:[#allocation8 + $0x98] sm:$0xff] %v1250_v34  ;;  %v3237_v6 = vld [vmem:[#allocation46_spill] sm:$0xff] }
 0x22d   :  { %v1256_v9 = vadd.f32 %v3203_v1, %v1131_v45  ;;  %v3209_v12 = vunpack.c.h.bf16 %v3207_v39  ;;  %v3211_v14 = vunpack.c.l.bf16 %v3210_v51  ;;  %1301 = vst [vmem:[#allocation8 + $0xa0] sm:$0xff] %v1251_v15  ;;  %1302 = vst [vmem:[#allocation8 + $0xa8] sm:$0xff] %v1252_v21  ;;  %v3212_v45 = vunpack.c.h.bf16 %v3210_v51  ;;  %v3228_v21 = vld [vmem:[#allocation43_spill] sm:$0xff] }
 0x22e   :  { %v1257_v0 = vadd.f32 %v3205_v29, %v1132_v33  ;;  %v1258_v31 = vadd.f32 %v3206_v19, %v1133_v50  ;;  %v1259_v32 = vadd.f32 %v3208_v5, %v1134_v20  ;;  %1303 = vst [vmem:[#allocation8 + $0xb0] sm:$0xff] %v1253_v26  ;;  %v1263_v55 = vadd.f32 %v3214_v28, %v1138_v53  ;;  %v3216_v20 = vld [vmem:[#allocation39_spill] sm:$0xff] }
 0x22f   :  { %v1260_v38 = vadd.f32 %v3209_v12, %v1135_v44  ;;  %v1261_v35 = vadd.f32 %v3211_v14, %v1136_v56  ;;  %v1262_v33 = vadd.f32 %v3212_v45, %v1137_v36  ;;  %v3215_v50 = vunpack.c.h.bf16 %v3213_v40  ;;  %1304 = vst [vmem:[#allocation8 + $0xb8] sm:$0xff] %v1254_v59  ;;  %1305 = vst [vmem:[#allocation8 + $0xc0] sm:$0xff] %v1255_v63 }
 0x230   :  { %v3217_v7 = vunpack.c.l.bf16 %v3216_v20  ;;  %1306 = vst [vmem:[#allocation8 + $0xc8] sm:$0xff] %v1256_v9  ;;  %1307 = vst [vmem:[#allocation8 + $0xd0] sm:$0xff] %v1257_v0  ;;  %v3218_v44 = vunpack.c.h.bf16 %v3216_v20  ;;  %v3220_v36 = vunpack.c.l.bf16 %v3219_v24  ;;  %v3221_v53 = vunpack.c.h.bf16 %v3219_v24 }
 0x231   :  { %v1264_v46 = vadd.f32 %v3215_v50, %v1139_v23  ;;  %v3223_v23 = vunpack.c.l.bf16 %v3222_v52  ;;  %1308 = vst [vmem:[#allocation8 + $0xd8] sm:$0xff] %v1258_v31  ;;  %1309 = vst [vmem:[#allocation8 + $0xe0] sm:$0xff] %v1259_v32  ;;  %v3238_v63 = vunpack.c.l.bf16 %v3237_v6 }
 0x232   :  { %v1265_v62 = vadd.f32 %v3217_v7, %v1140_v48  ;;  %v1266_v56 = vadd.f32 %v3218_v44, %v1141_v42  ;;  %v1267_v2 = vadd.f32 %v3220_v36, %v1142_v49  ;;  %v1268_v18 = vadd.f32 %v3221_v53, %v1143_v13  ;;  %1310 = vst [vmem:[#allocation8 + $0xe8] sm:$0xff] %v1260_v38 }
 0x233   :  { %v1269_v34 = vadd.f32 %v3223_v23, %v1144_v47  ;;  %1311 = vst [vmem:[#allocation8 + $0xf0] sm:$0xff] %v1261_v35  ;;  %v3224_v48 = vunpack.c.h.bf16 %v3222_v52  ;;  %v3226_v42 = vunpack.c.l.bf16 %v3225_v22  ;;  %v3227_v49 = vunpack.c.h.bf16 %v3225_v22  ;;  %1312 = vst [vmem:[#allocation8 + $0xf8] sm:$0xff] %v1262_v33 }
 0x234   :  { %v3229_v13 = vunpack.c.l.bf16 %v3228_v21  ;;  %1313 = vst [vmem:[#allocation8 + $0x100] sm:$0xff] %v1263_v55  ;;  %1314 = vst [vmem:[#allocation8 + $0x108] sm:$0xff] %v1264_v46  ;;  %v3230_v47 = vunpack.c.h.bf16 %v3228_v21 }
 0x235   :  { %v1270_v30 = vadd.f32 %v3224_v48, %v2729_v10  ;;  %v1271_v15 = vadd.f32 %v3226_v42, %v2732_v58  ;;  %v1272_v8 = vadd.f32 %v3227_v49, %v1147_v60  ;;  %1315 = vst [vmem:[#allocation8 + $0x110] sm:$0xff] %v1265_v62  ;;  %v3231_v10 = vld [vmem:[#allocation44_spill] sm:$0xff]  ;;  %v3234_v60 = vld [vmem:[#allocation45_spill] sm:$0xff]  ;;  %1316 = vst [vmem:[#allocation8 + $0x118] sm:$0xff] %v1266_v56 }
 0x236   :  { %v1273_v25 = vadd.f32 %v3229_v13, %v1148_v27  ;;  %v1274_v16 = vadd.f32 %v3230_v47, %v2739_v4  ;;  %v3232_v26 = vunpack.c.l.bf16 %v3231_v10  ;;  %v3233_v58 = vunpack.c.h.bf16 %v3231_v10  ;;  %1317 = vst [vmem:[#allocation8 + $0x120] sm:$0xff] %v1267_v2  ;;  %1318 = vst [vmem:[#allocation8 + $0x128] sm:$0xff] %v1268_v18 }
 0x237   :  { %v3235_v11 = vunpack.c.l.bf16 %v3234_v60  ;;  %1319 = vst [vmem:[#allocation8 + $0x130] sm:$0xff] %v1269_v34  ;;  %v3236_v4 = vunpack.c.h.bf16 %v3234_v60  ;;  %1320 = vst [vmem:[#allocation8 + $0x138] sm:$0xff] %v1270_v30 }
 0x238   :  { %v1275_v57 = vadd.f32 %v3232_v26, %v2744_v37  ;;  %v1276_v59 = vadd.f32 %v3233_v58, %v2747_v3  ;;  %v1279_v3 = vadd.f32 %v3238_v63, %v2758_v43  ;;  %1321 = vst [vmem:[#allocation8 + $0x140] sm:$0xff] %v1271_v15  ;;  %1322 = vst [vmem:[#allocation8 + $0x148] sm:$0xff] %v1272_v8 }
 0x239   :  { %v1277_v27 = vadd.f32 %v3235_v11, %v2750_v54  ;;  %v1278_v37 = vadd.f32 %v3236_v4, %v2755_v17  ;;  %v3239_v54 = vunpack.c.h.bf16 %v3237_v6  ;;  %1323 = vst [vmem:[#allocation8 + $0x150] sm:$0xff] %v1273_v25  ;;  %1324 = vst [vmem:[#allocation8 + $0x158] sm:$0xff] %v1274_v16 }
 0x23a   :  { %1325 = vst [vmem:[#allocation8 + $0x160] sm:$0xff] %v1275_v57  ;;  %1326 = vst [vmem:[#allocation8 + $0x168] sm:$0xff] %v1276_v59 }
 0x23b   :  { %v1280_v1 = vadd.f32 %v3239_v54, %v2761_v61  ;;  %1327 = vst [vmem:[#allocation8 + $0x170] sm:$0xff] %v1277_v27  ;;  %1328 = vst [vmem:[#allocation8 + $0x178] sm:$0xff] %v1278_v37 }
 0x23c   :  { %1329 = vst [vmem:[#allocation8 + $0x180] sm:$0xff] %v1279_v3 }
 0x23d   :  { %1330 = vst [vmem:[#allocation8 + $0x188] sm:$0xff] %v1280_v1 }
 0x23e   :  { %1615 = shalt.err (!%p1612_p0)
}
 0x23f   :  { %s1616_s10 = scalar_lea.hbm %s2868_s5, 6400 }
 0x240   :  { %p1617_p1 = scmp.ne.s32.totalorder %s2868_s5, %s1616_s10  ;;  %p1620_p2 = scmp.lt.u32.totalorder %s1616_s10, %s2868_s5 }
 0x242   :  { %p1622_p3 = pnand %p1620_p2, %p1617_p1 }
 0x244   :  { %1625 = shalt.err (!%p1622_p3)
}
 0x245   :  { %s1639_s15 = smov 256   ;;  %s1640_s16 = smov 16  }
 0x246   :  { %1342 = dma.vmem_to_hbm [thread:$0]  %s2835_s6, 6400, %s2868_s5, [#allocation4], %s1639_s15, %s1639_s15, %s1640_s16  }
 0x247   :  { %1630 = dma.done.wait [#allocation4], 6400  }
 0x248   :  { %1631 = vsyncadd [#allocation4], 4294960896 }
 0x249   :  { %1346 = vsyncpa [#allocation3], 1 }
 0x24a   :  { %1347 = vsyncpa [#allocation6], 1 }
 0x24b   :  { %1348 = vsyncpa [#allocation4], 1 }

</bundles_post_ra>
